<compile_context>
chip_gen: v6e
topology: v6e:2x2x1
jax: 0.10.0
libtpu: 0.0.40
codegen_flags: <defaults>
</compile_context>

<pallas_src>
import math
import numpy as np
import jax
import jax.numpy as jnp
from jax import lax
from jax.experimental import pallas as pl
from jax.experimental.pallas import tpu as pltpu

POOL_SIZES = (2, 4, 8)
CMID = 64          # GradualBottleNeck mid channels
GN_EPS = 1e-5
LANE = 128         # TPU lane width; branch spatial blocks are padded to a multiple of this


def rank_divisor(n, rk=1):
    cn = 0
    for i in range(1, n + 1):
        if n % i == 0:
            cn += 1
            if cn == rk:
                return i
    return 1


def _round_up(n, m):
    return -(-n // m) * m


# ----------------- host-side constant matrices (static shapes, numpy) ---------------

def _avgpool1d_matrix(out_size, in_size, s):
    p = np.zeros((out_size, in_size), np.float32)
    for o in range(out_size):
        p[o, o * s:(o + 1) * s] = 1.0 / s
    return p


def _interp1d_matrix(out_size, in_size):
    # 1-D bilinear interpolation weights, align_corners=True (PyTorch semantics).
    a = np.zeros((out_size, in_size), np.float32)
    if in_size == 1:
        a[:, 0] = 1.0
        return a
    for o in range(out_size):
        src = 0.0 if out_size == 1 else o * (in_size - 1) / (out_size - 1)
        i0 = min(int(np.floor(src)), in_size - 1)
        i1 = min(i0 + 1, in_size - 1)
        w1 = src - i0
        a[o, i0] += 1.0 - w1
        a[o, i1] += w1
    return a


def _tap_masks(ho, wo):
    # m[t, y*wo + x] = 1 iff tap t = ky*3 + kx of the zero-padded 3x3 'same' conv reads
    # an in-bounds pixel at output position (y, x).
    m = np.zeros((9, ho * wo), np.float32)
    for ky in range(3):
        for kx in range(3):
            t = ky * 3 + kx
            for y in range(ho):
                yy = y + ky - 1
                if not (0 <= yy < ho):
                    continue
                for x in range(wo):
                    xx = x + kx - 1
                    if 0 <= xx < wo:
                        m[t, y * wo + x] = 1.0
    return m


# ----------------- parameter folding (jnp ops, jit-traceable) -----------------------

def _fold_taps(w3, w1):
    """Fold the bias-free 1x1 conv into the 9 taps of the bias-free 3x3 conv.

    w3: (CMID, Cin, 3, 3), w1: (Cout, CMID, 1, 1) -> (9, Cin, Cout), tap t = ky*3+kx."""
    cmid, cin = w3.shape[0], w3.shape[1]
    w3_t = jnp.transpose(w3, (2, 3, 1, 0)).reshape(9, cin, cmid)   # (9, Cin, CMID)
    w1_t = jnp.transpose(w1[:, :, 0, 0])                           # (CMID, Cout)
    return jnp.einsum("tcm,mo->tco", w3_t, w1_t)


def _mix_matrix(wf, batch):
    """Block-diagonal-over-batch channel-mix matrix for the tap-stacked matmul.

    wf: (9, Cin, Cout) -> M: (batch*Cout, 9*batch*Cin) with
    M[b*Cout+co, t*batch*Cin + b*Cin + ci] = wf[t, ci, co]."""
    t9, cin, cout = wf.shape
    eye_b = jnp.eye(batch, dtype=wf.dtype)
    m5 = jnp.einsum("tco,bd->botdc", wf, eye_b)      # (batch, Cout, 9, batch, Cin)
    return m5.reshape(batch * cout, t9 * batch * cin)


# ----------------------------- in-kernel helpers ------------------------------------

def _gelu_exact(x):
    # nn.GELU() (exact, erf form).  erf via Abramowitz & Stegun 7.1.26 (|err| <= 1.5e-7);
    # the divide goes to the EUP via an approximate reciprocal -- its error is far below
    # the bf16-matmul noise of the surrounding pipeline.
    # TODO(synk): use lax.erf directly once Mosaic guarantees an erf lowering.
    a1, a2, a3, a4, a5 = (0.254829592, -0.284496736, 1.421413741,
                          -1.453152027, 1.061405429)
    p = 0.3275911
    z = jnp.abs(x) * (1.0 / math.sqrt(2.0))
    t = pl.reciprocal(1.0 + p * z, approx=True)
    poly = ((((a5 * t + a4) * t + a3) * t + a2) * t + a1) * t
    erf_abs = 1.0 - poly * jnp.exp(-z * z)
    erf = jnp.where(x >= 0.0, erf_abs, -erf_abs)
    return 0.5 * x * (1.0 + erf)


def _shift_stack(z, wo, masks):
    """Tap-stacked operand (9*R, N) of a zero-padded 3x3 'same' conv.

    z: (R, N) with rows = (batch, channel) and the row-major (ho, wo) spatial occupying
    lanes [0, ho*wo); any remaining lanes are exactly zero.  Each tap is an XLU lane
    rotation (pltpu.roll, jnp.roll semantics) followed by a validity-mask multiply.
    Masks are mandatory for every non-center tap because the rotation wraps around the
    lane axis; the center tap needs no mask (identity, and padding lanes are already
    zero).  The 9 masked copies are concatenated on the sublane axis (tap-major) so the
    whole channel contraction is a single MXU matmul of depth 9*R."""
    r, n = z.shape
    parts = []
    for ky in range(3):
        for kx in range(3):
            t = ky * 3 + kx
            off = (ky - 1) * wo + (kx - 1)
            if off == 0:
                parts.append(z)                      # center tap: mask is all-ones
            else:
                s = pltpu.roll(z, shift=(-off) % n, axis=1)
                parts.append(s * masks[t:t + 1, :])
    return jnp.concatenate(parts, axis=0)


# ----------------------------- the Pallas kernel ------------------------------------

def _make_kernel(h, w, pool_sizes):
    # Static per-branch geometry: (ho, wo, n_valid, n_padded, lane_offset).
    branch, off = [], 0
    for s in pool_sizes:
        ho, wo = h // s, w // s
        n_i = ho * wo
        npad = _round_up(n_i, LANE)
        branch.append((ho, wo, n_i, npad, off))
        off += npad

    def kernel(x_ref, mmix_ref, msum_ref, gam_ref, bet_ref, pall_ref, uall_ref,
               mb0_ref, mb1_ref, mb2_ref, mks_ref, o_ref):
        mask_refs = (mb0_ref, mb1_ref, mb2_ref)
        x = x_ref[...]                                   # (B*K, H*W) f32, rows = b*K + c

        # One fused AvgPool matmul for all three branches (lane blocks padded to 128).
        # Kept in f32: this feeds GroupNorm, whose 1/std amplifies operand rounding.
        pooled_all = jnp.dot(x, pall_ref[...], preferred_element_type=jnp.float32)

        yns = []
        for i, (ho, wo, n_i, npad, lane_off) in enumerate(branch):
            pooled = pooled_all[:, lane_off:lane_off + npad]          # (B*K, npad)
            masks = mask_refs[i][...]                                 # (9, npad)
            # Folded 3x3 -> 1x1 bottleneck: one matmul over (tap, batch, cin), f32.
            ss = _shift_stack(pooled, wo, masks)                      # (9*B*K, npad)
            y = jnp.dot(mmix_ref[i], ss, preferred_element_type=jnp.float32)  # (B*K, npad)
            # GroupNorm with groups == channels: per-channel spatial statistics only
            # (the identity group-average matmuls of the previous version are gone).
            # Padding lanes of `y` are exactly zero (zero pool columns + masked taps),
            # so plain lane sums give exact statistics; the affine garbage that appears
            # on padding lanes afterwards is nulled by the zero rows of the upsample
            # operator.
            inv_n = 1.0 / n_i
            mean = jnp.sum(y, axis=1, keepdims=True) * inv_n          # (B*K, 1)
            ex2 = jnp.sum(y * y, axis=1, keepdims=True) * inv_n
            var = jnp.maximum(ex2 - mean * mean, 0.0)
            yn = (y - mean) * lax.rsqrt(var + GN_EPS)
            yn = yn * gam_ref[i] + bet_ref[i]
            yns.append(yn.astype(jnp.bfloat16))

        # One fused bilinear-upsample (align_corners=True) matmul for all three branches,
        # plus a single residual add (bf16 operands, f32 accumulate).
        up = jnp.dot(jnp.concatenate(yns, axis=1), uall_ref[...],
                     preferred_element_type=jnp.float32)              # (B*K, H*W)
        resl = _gelu_exact(x + up)

        # conv_sum: folded 3x3 -> 1x1, K -> K_OUT, on the full-resolution tile.
        ss = _shift_stack(resl, w, mks_ref[...])                      # (9*B*K, H*W)
        out = jnp.dot(msum_ref[...], ss.astype(jnp.bfloat16),
                      preferred_element_type=jnp.float32)             # (B*K_OUT, H*W)
        o_ref[...] = out.astype(o_ref.dtype)

    return kernel


# ------------------------------ wrapper / parameters --------------------------------

def init_deeppool_params(key, k, k_out, cmid=CMID):
    """Deterministic stand-in for the PyTorch parameters (kept in PyTorch layouts)."""
    nb = len(POOL_SIZES)
    keys = jax.random.split(key, 2 * nb + 2)

    def conv_w(kk, cout, cin, kh, kw):
        fan_in = cin * kh * kw
        return jax.random.normal(kk, (cout, cin, kh, kw), jnp.float32) / np.sqrt(fan_in)

    return {
        "w3": [conv_w(keys[i], cmid, k, 3, 3) for i in range(nb)],
        "w1": [conv_w(keys[nb + i], k, cmid, 1, 1) for i in range(nb)],
        "gamma": [jnp.ones((k,), jnp.float32) for _ in range(nb)],   # GroupNorm weight
        "beta": [jnp.zeros((k,), jnp.float32) for _ in range(nb)],   # GroupNorm bias
        "w3_sum": conv_w(keys[-2], cmid, k, 3, 3),
        "w1_sum": conv_w(keys[-1], k_out, cmid, 1, 1),
    }


def deep_pool_layer(x_nchw, params):
    """DeepPoolLayer forward (need_x2=False, need_fuse=False, need_bn=False, need_gn=True)."""
    b, k, h, w = x_nchw.shape
    k_out = params["w1_sum"].shape[0]
    groups = rank_divisor(k, 3)
    # For k=4, rank_divisor(4, 3) == 4 -> groups == channels and GroupNorm degenerates to
    # per-channel spatial normalization (no cross-channel averaging needed in-kernel).
    if groups != k:
        # TODO(synk): reintroduce the block-diagonal group-average matmul for configs
        # where rank_divisor(k, 3) < k.
        raise NotImplementedError("kernel specialized to groups == channels")
    hw = h * w
    bk = b * k
    nb = len(POOL_SIZES)

    # NCHW is already (batch, channel)-major with row-major spatial: flatten only.
    x_rows = x_nchw.reshape(bk, hw).astype(jnp.float32)              # (B*K, H*W)

    # Fold the 1x1 conv into the 3x3 taps and build channel-mix matrices.
    # Branch mixes stay f32 (they feed GroupNorm); the final conv mix is bf16.
    mmix = jnp.stack([_mix_matrix(_fold_taps(params["w3"][i], params["w1"][i]), b)
                      for i in range(nb)])                           # (3, B*K, 9*B*K) f32
    msum = _mix_matrix(_fold_taps(params["w3_sum"], params["w1_sum"]), b
                       ).astype(jnp.bfloat16)                        # (B*K_OUT, 9*B*K)

    gam = jnp.stack([jnp.tile(params["gamma"][i], b).reshape(bk, 1) for i in range(nb)])
    bet = jnp.stack([jnp.tile(params["beta"][i], b).reshape(bk, 1) for i in range(nb)])

    # Fused, lane-padded pool / upsample operators and per-branch tap masks.
    pool_blocks, up_blocks, masks = [], [], []
    for s in POOL_SIZES:
        ho, wo = h // s, w // s
        n_i = ho * wo
        npad = _round_up(n_i, LANE)
        p = np.kron(_avgpool1d_matrix(ho, h, s), _avgpool1d_matrix(wo, w, s)).T  # (HW, n_i)
        u = np.kron(_interp1d_matrix(h, ho), _interp1d_matrix(w, wo)).T          # (n_i, HW)
        pool_blocks.append(np.pad(p, ((0, 0), (0, npad - n_i))))
        up_blocks.append(np.pad(u, ((0, npad - n_i), (0, 0))))
        masks.append(jnp.asarray(np.pad(_tap_masks(ho, wo), ((0, 0), (0, npad - n_i)))))
    p_all = jnp.asarray(np.concatenate(pool_blocks, axis=1))             # (HW, sum npad) f32
    u_all = jnp.asarray(np.concatenate(up_blocks, axis=0), jnp.bfloat16)  # (sum npad, HW)
    mask_sum = jnp.asarray(_tap_masks(h, w))                              # (9, HW)

    inputs = [x_rows, mmix, msum, gam, bet, p_all, u_all] + masks + [mask_sum]

    def full_spec(a):
        nd = a.ndim
        return pl.BlockSpec(a.shape, lambda i, _nd=nd: (0,) * _nd)

    # Constants total < 2 MiB; everything fits in VMEM on every generation and the grid
    # is one step (batch folded onto the sublane axis), so there is no per-step overhead
    # or repeated weight DMA to amortize and no vmem_limit_bytes is required.
    grid_spec = pltpu.PrefetchScalarGridSpec(
        num_scalar_prefetch=0,
        grid=(1,),
        in_specs=[full_spec(a) for a in inputs],
        out_specs=pl.BlockSpec((b * k_out, hw), lambda i: (0, 0)),
    )

    out_rows = pl.pallas_call(
        _make_kernel(h, w, POOL_SIZES),
        out_shape=jax.ShapeDtypeStruct((b * k_out, hw), jnp.float32),
        grid_spec=grid_spec,
        compiler_params=pltpu.CompilerParams(dimension_semantics=("arbitrary",)),
    )(*inputs)

    # (B*K_OUT, H*W) rows are exactly flattened NCHW.
    return out_rows.reshape(b, k_out, h, w)


# ------------------------------ plain-JAX reference ---------------------------------

def reference_forward(x_nchw, params):
    x = jnp.transpose(x_nchw, (0, 2, 3, 1)).astype(jnp.float32)   # NHWC
    b, h, w, k = x.shape
    groups = rank_divisor(k, 3)
    cpg = k // groups

    def conv3x3(z, w_t):
        return lax.conv_general_dilated(
            z, jnp.transpose(w_t, (2, 3, 1, 0)), (1, 1), "SAME",
            dimension_numbers=("NHWC", "HWIO", "NHWC"))

    def conv1x1(z, w_t):
        return jnp.einsum("bhwc,dc->bhwd", z, w_t[:, :, 0, 0])

    resl = x
    for i, s in enumerate(POOL_SIZES):
        ho, wo = h // s, w // s
        pooled = x.reshape(b, ho, s, wo, s, k).mean(axis=(2, 4))
        y = conv1x1(conv3x3(pooled, params["w3"][i]), params["w1"][i])
        yg = y.reshape(b, ho, wo, groups, cpg)
        mean = yg.mean(axis=(1, 2, 4), keepdims=True)
        var = jnp.mean((yg - mean) ** 2, axis=(1, 2, 4), keepdims=True)
        yg = (yg - mean) * lax.rsqrt(var + GN_EPS)
        y = yg.reshape(b, ho, wo, k) * params["gamma"][i] + params["beta"][i]
        ah = jnp.asarray(_interp1d_matrix(h, ho))
        aw = jnp.asarray(_interp1d_matrix(w, wo))
        up = jnp.einsum("hp,wq,bpqc->bhwc", ah, aw, y)
        resl = resl + up
    resl = jax.nn.gelu(resl, approximate=False)
    out = conv1x1(conv3x3(resl, params["w3_sum"]), params["w1_sum"])
    return jnp.transpose(out, (0, 3, 1, 2))


if __name__ == "__main__":
    B, K, K_OUT, H, W = 2, 4, 16, 16, 16   # placeholder, overwritten just below
    B, K, K_OUT, H, W = 2, 4, 8, 16, 16    # H, W divisible by the largest pool size (8)
    root = jax.random.PRNGKey(0)
    kx, kp = jax.random.split(root)
    x = jax.random.normal(kx, (B, K, H, W), jnp.float32)   # NCHW, like the PyTorch module
    params = init_deeppool_params(kp, K, K_OUT)

    out = jax.jit(deep_pool_layer)(x, params)
    out = jax.block_until_ready(out)
    assert out.shape == (B, K_OUT, H, W) and out.dtype == jnp.float32

    ref = reference_forward(x, params)
    # Tolerance reflects bf16 MXU operands on the upsample / conv_sum stages (the
    # GroupNorm-feeding matmuls stay f32, so no 1/std amplification of rounding noise);
    # worst-element error sits at a few 1e-2.
    np.testing.assert_allclose(np.asarray(out), np.asarray(ref), rtol=2e-2, atol=5e-2)
    print("KERNEL_OK")
</pallas_src>

<mosaic_0001>
module attributes {stable_mosaic.version = 11 : i64} {
  func.func @kernel(%arg0: i32, %arg1: memref<8x256xf32, #tpu.memory_space<vmem>>, %arg2: memref<3x8x72xf32, #tpu.memory_space<vmem>>, %arg3: memref<16x72xbf16, #tpu.memory_space<vmem>>, %arg4: memref<3x8x1xf32, #tpu.memory_space<vmem>>, %arg5: memref<3x8x1xf32, #tpu.memory_space<vmem>>, %arg6: memref<256x384xf32, #tpu.memory_space<vmem>>, %arg7: memref<384x256xbf16, #tpu.memory_space<vmem>>, %arg8: memref<9x128xf32, #tpu.memory_space<vmem>>, %arg9: memref<9x128xf32, #tpu.memory_space<vmem>>, %arg10: memref<9x128xf32, #tpu.memory_space<vmem>>, %arg11: memref<9x256xf32, #tpu.memory_space<vmem>>, %arg12: memref<16x256xf32, #tpu.memory_space<vmem>>) attributes {dimension_semantics = [#tpu.dimension_semantics<arbitrary>], iteration_bounds = array<i64: 1>, scalar_prefetch = 0 : i64, scratch_operands = 0 : i64, tpu.core_type = #tpu.core_type<tc>, window_params = [{pipeline_mode = #tpu.pipeline_mode<synchronous>, transform_indices = @transform_0, window_bounds = array<i64: 8, 256>}, {pipeline_mode = #tpu.pipeline_mode<synchronous>, transform_indices = @transform_1, window_bounds = array<i64: 3, 8, 72>}, {pipeline_mode = #tpu.pipeline_mode<synchronous>, transform_indices = @transform_2, window_bounds = array<i64: 16, 72>}, {pipeline_mode = #tpu.pipeline_mode<synchronous>, transform_indices = @transform_3, window_bounds = array<i64: 3, 8, 1>}, {pipeline_mode = #tpu.pipeline_mode<synchronous>, transform_indices = @transform_4, window_bounds = array<i64: 3, 8, 1>}, {pipeline_mode = #tpu.pipeline_mode<synchronous>, transform_indices = @transform_5, window_bounds = array<i64: 256, 384>}, {pipeline_mode = #tpu.pipeline_mode<synchronous>, transform_indices = @transform_6, window_bounds = array<i64: 384, 256>}, {pipeline_mode = #tpu.pipeline_mode<synchronous>, transform_indices = @transform_7, window_bounds = array<i64: 9, 128>}, {pipeline_mode = #tpu.pipeline_mode<synchronous>, transform_indices = @transform_8, window_bounds = array<i64: 9, 128>}, {pipeline_mode = #tpu.pipeline_mode<synchronous>, transform_indices = @transform_9, window_bounds = array<i64: 9, 128>}, {pipeline_mode = #tpu.pipeline_mode<synchronous>, transform_indices = @transform_10, window_bounds = array<i64: 9, 256>}, {pipeline_mode = #tpu.pipeline_mode<synchronous>, transform_indices = @transform_11, window_bounds = array<i64: 16, 256>}]} {
    %c0 = arith.constant 0 : index
    %c0_0 = arith.constant 0 : index
    %0 = vector.load %arg1[%c0, %c0_0] : memref<8x256xf32, #tpu.memory_space<vmem>>, vector<8x256xf32>
    %c0_1 = arith.constant 0 : index
    %c0_2 = arith.constant 0 : index
    %1 = vector.load %arg6[%c0_1, %c0_2] : memref<256x384xf32, #tpu.memory_space<vmem>>, vector<256x384xf32>
    %cst = arith.constant dense<0.000000e+00> : vector<8x384xf32>
    %2 = tpu.matmul %0, %1, %cst {dimension_numbers = #tpu.dot_dimension_numbers<[1], [0], [0], [1], [0, 0, 1, 1], [], []>} : vector<8x256xf32>, vector<256x384xf32>, vector<8x384xf32> -> vector<8x384xf32>
    %3 = vector.extract_strided_slice %2 {offsets = [0, 0], sizes = [8, 128], strides = [1, 1]} : vector<8x384xf32> to vector<8x128xf32>
    %c0_3 = arith.constant 0 : index
    %c0_4 = arith.constant 0 : index
    %4 = vector.load %arg8[%c0_3, %c0_4] : memref<9x128xf32, #tpu.memory_space<vmem>>, vector<9x128xf32>
    %c9_i32 = arith.constant 9 : i32
    %5 = tpu.dynamic_rotate %3 by %c9_i32 dim 1 : vector<8x128xf32>, i32 -> vector<8x128xf32>
    %6 = vector.extract_strided_slice %4 {offsets = [0, 0], sizes = [1, 128], strides = [1, 1]} : vector<9x128xf32> to vector<1x128xf32>
    %7 = vector.broadcast %6 : vector<1x128xf32> to vector<8x128xf32>
    %8 = arith.mulf %5, %7 : vector<8x128xf32>
    %c8_i32 = arith.constant 8 : i32
    %9 = tpu.dynamic_rotate %3 by %c8_i32 dim 1 : vector<8x128xf32>, i32 -> vector<8x128xf32>
    %10 = vector.extract_strided_slice %4 {offsets = [1, 0], sizes = [1, 128], strides = [1, 1]} : vector<9x128xf32> to vector<1x128xf32>
    %11 = vector.broadcast %10 : vector<1x128xf32> to vector<8x128xf32>
    %12 = arith.mulf %9, %11 : vector<8x128xf32>
    %c7_i32 = arith.constant 7 : i32
    %13 = tpu.dynamic_rotate %3 by %c7_i32 dim 1 : vector<8x128xf32>, i32 -> vector<8x128xf32>
    %14 = vector.extract_strided_slice %4 {offsets = [2, 0], sizes = [1, 128], strides = [1, 1]} : vector<9x128xf32> to vector<1x128xf32>
    %15 = vector.broadcast %14 : vector<1x128xf32> to vector<8x128xf32>
    %16 = arith.mulf %13, %15 : vector<8x128xf32>
    %c1_i32 = arith.constant 1 : i32
    %17 = tpu.dynamic_rotate %3 by %c1_i32 dim 1 : vector<8x128xf32>, i32 -> vector<8x128xf32>
    %18 = vector.extract_strided_slice %4 {offsets = [3, 0], sizes = [1, 128], strides = [1, 1]} : vector<9x128xf32> to vector<1x128xf32>
    %19 = vector.broadcast %18 : vector<1x128xf32> to vector<8x128xf32>
    %20 = arith.mulf %17, %19 : vector<8x128xf32>
    %c127_i32 = arith.constant 127 : i32
    %21 = tpu.dynamic_rotate %3 by %c127_i32 dim 1 : vector<8x128xf32>, i32 -> vector<8x128xf32>
    %22 = vector.extract_strided_slice %4 {offsets = [5, 0], sizes = [1, 128], strides = [1, 1]} : vector<9x128xf32> to vector<1x128xf32>
    %23 = vector.broadcast %22 : vector<1x128xf32> to vector<8x128xf32>
    %24 = arith.mulf %21, %23 : vector<8x128xf32>
    %c121_i32 = arith.constant 121 : i32
    %25 = tpu.dynamic_rotate %3 by %c121_i32 dim 1 : vector<8x128xf32>, i32 -> vector<8x128xf32>
    %26 = vector.extract_strided_slice %4 {offsets = [6, 0], sizes = [1, 128], strides = [1, 1]} : vector<9x128xf32> to vector<1x128xf32>
    %27 = vector.broadcast %26 : vector<1x128xf32> to vector<8x128xf32>
    %28 = arith.mulf %25, %27 : vector<8x128xf32>
    %c120_i32 = arith.constant 120 : i32
    %29 = tpu.dynamic_rotate %3 by %c120_i32 dim 1 : vector<8x128xf32>, i32 -> vector<8x128xf32>
    %30 = vector.extract_strided_slice %4 {offsets = [7, 0], sizes = [1, 128], strides = [1, 1]} : vector<9x128xf32> to vector<1x128xf32>
    %31 = vector.broadcast %30 : vector<1x128xf32> to vector<8x128xf32>
    %32 = arith.mulf %29, %31 : vector<8x128xf32>
    %c119_i32 = arith.constant 119 : i32
    %33 = tpu.dynamic_rotate %3 by %c119_i32 dim 1 : vector<8x128xf32>, i32 -> vector<8x128xf32>
    %34 = vector.extract_strided_slice %4 {offsets = [8, 0], sizes = [1, 128], strides = [1, 1]} : vector<9x128xf32> to vector<1x128xf32>
    %35 = vector.broadcast %34 : vector<1x128xf32> to vector<8x128xf32>
    %36 = arith.mulf %33, %35 : vector<8x128xf32>
    %37 = tpu.concatenate %8, %12, %16, %20, %3, %24, %28, %32, %36 in 0 : vector<8x128xf32>, vector<8x128xf32>, vector<8x128xf32>, vector<8x128xf32>, vector<8x128xf32>, vector<8x128xf32>, vector<8x128xf32>, vector<8x128xf32>, vector<8x128xf32> -> vector<72x128xf32>
    %c0_5 = arith.constant 0 : index
    %c0_6 = arith.constant 0 : index
    %c0_7 = arith.constant 0 : index
    %38 = vector.load %arg2[%c0_5, %c0_6, %c0_7] : memref<3x8x72xf32, #tpu.memory_space<vmem>>, vector<1x8x72xf32>
    %39 = vector.shape_cast %38 : vector<1x8x72xf32> to vector<8x72xf32>
    %cst_8 = arith.constant dense<0.000000e+00> : vector<8x128xf32>
    %40 = tpu.matmul %39, %37, %cst_8 {dimension_numbers = #tpu.dot_dimension_numbers<[1], [0], [0], [1], [0, 0, 1, 1], [], []>} : vector<8x72xf32>, vector<72x128xf32>, vector<8x128xf32> -> vector<8x128xf32>
    %cst_9 = arith.constant dense<0.000000e+00> : vector<8xf32>
    %41 = vector.multi_reduction <add>, %40, %cst_9 [1] : vector<8x128xf32> to vector<8xf32>
    %42 = vector.shape_cast %41 : vector<8xf32> to vector<8x1xf32>
    %cst_10 = arith.constant 1.562500e-02 : f32
    %43 = vector.broadcast %cst_10 : f32 to vector<8x1xf32>
    %44 = arith.mulf %42, %43 : vector<8x1xf32>
    %45 = arith.mulf %40, %40 : vector<8x128xf32>
    %cst_11 = arith.constant dense<0.000000e+00> : vector<8xf32>
    %46 = vector.multi_reduction <add>, %45, %cst_11 [1] : vector<8x128xf32> to vector<8xf32>
    %47 = vector.shape_cast %46 : vector<8xf32> to vector<8x1xf32>
    %cst_12 = arith.constant 1.562500e-02 : f32
    %48 = vector.broadcast %cst_12 : f32 to vector<8x1xf32>
    %49 = arith.mulf %47, %48 : vector<8x1xf32>
    %50 = arith.mulf %44, %44 : vector<8x1xf32>
    %51 = arith.subf %49, %50 : vector<8x1xf32>
    %cst_13 = arith.constant 0.000000e+00 : f32
    %52 = vector.broadcast %cst_13 : f32 to vector<8x1xf32>
    %53 = arith.maximumf %51, %52 : vector<8x1xf32>
    %54 = vector.broadcast %44 : vector<8x1xf32> to vector<8x128xf32>
    %55 = arith.subf %40, %54 : vector<8x128xf32>
    %cst_14 = arith.constant 9.99999974E-6 : f32
    %56 = vector.broadcast %cst_14 : f32 to vector<8x1xf32>
    %57 = arith.addf %53, %56 : vector<8x1xf32>
    %58 = math.rsqrt %57 : vector<8x1xf32>
    %59 = vector.broadcast %58 : vector<8x1xf32> to vector<8x128xf32>
    %60 = arith.mulf %55, %59 : vector<8x128xf32>
    %c0_15 = arith.constant 0 : index
    %c0_16 = arith.constant 0 : index
    %c0_17 = arith.constant 0 : index
    %61 = vector.load %arg4[%c0_15, %c0_16, %c0_17] : memref<3x8x1xf32, #tpu.memory_space<vmem>>, vector<1x8x1xf32>
    %62 = vector.shape_cast %61 : vector<1x8x1xf32> to vector<8x1xf32>
    %63 = vector.broadcast %62 : vector<8x1xf32> to vector<8x128xf32>
    %64 = arith.mulf %60, %63 : vector<8x128xf32>
    %c0_18 = arith.constant 0 : index
    %c0_19 = arith.constant 0 : index
    %c0_20 = arith.constant 0 : index
    %65 = vector.load %arg5[%c0_18, %c0_19, %c0_20] : memref<3x8x1xf32, #tpu.memory_space<vmem>>, vector<1x8x1xf32>
    %66 = vector.shape_cast %65 : vector<1x8x1xf32> to vector<8x1xf32>
    %67 = vector.broadcast %66 : vector<8x1xf32> to vector<8x128xf32>
    %68 = arith.addf %64, %67 : vector<8x128xf32>
    %69 = arith.truncf %68 : vector<8x128xf32> to vector<8x128xbf16>
    %70 = vector.extract_strided_slice %2 {offsets = [0, 128], sizes = [8, 128], strides = [1, 1]} : vector<8x384xf32> to vector<8x128xf32>
    %c0_21 = arith.constant 0 : index
    %c0_22 = arith.constant 0 : index
    %71 = vector.load %arg9[%c0_21, %c0_22] : memref<9x128xf32, #tpu.memory_space<vmem>>, vector<9x128xf32>
    %c5_i32 = arith.constant 5 : i32
    %72 = tpu.dynamic_rotate %70 by %c5_i32 dim 1 : vector<8x128xf32>, i32 -> vector<8x128xf32>
    %73 = vector.extract_strided_slice %71 {offsets = [0, 0], sizes = [1, 128], strides = [1, 1]} : vector<9x128xf32> to vector<1x128xf32>
    %74 = vector.broadcast %73 : vector<1x128xf32> to vector<8x128xf32>
    %75 = arith.mulf %72, %74 : vector<8x128xf32>
    %c4_i32 = arith.constant 4 : i32
    %76 = tpu.dynamic_rotate %70 by %c4_i32 dim 1 : vector<8x128xf32>, i32 -> vector<8x128xf32>
    %77 = vector.extract_strided_slice %71 {offsets = [1, 0], sizes = [1, 128], strides = [1, 1]} : vector<9x128xf32> to vector<1x128xf32>
    %78 = vector.broadcast %77 : vector<1x128xf32> to vector<8x128xf32>
    %79 = arith.mulf %76, %78 : vector<8x128xf32>
    %c3_i32 = arith.constant 3 : i32
    %80 = tpu.dynamic_rotate %70 by %c3_i32 dim 1 : vector<8x128xf32>, i32 -> vector<8x128xf32>
    %81 = vector.extract_strided_slice %71 {offsets = [2, 0], sizes = [1, 128], strides = [1, 1]} : vector<9x128xf32> to vector<1x128xf32>
    %82 = vector.broadcast %81 : vector<1x128xf32> to vector<8x128xf32>
    %83 = arith.mulf %80, %82 : vector<8x128xf32>
    %c1_i32_23 = arith.constant 1 : i32
    %84 = tpu.dynamic_rotate %70 by %c1_i32_23 dim 1 : vector<8x128xf32>, i32 -> vector<8x128xf32>
    %85 = vector.extract_strided_slice %71 {offsets = [3, 0], sizes = [1, 128], strides = [1, 1]} : vector<9x128xf32> to vector<1x128xf32>
    %86 = vector.broadcast %85 : vector<1x128xf32> to vector<8x128xf32>
    %87 = arith.mulf %84, %86 : vector<8x128xf32>
    %c127_i32_24 = arith.constant 127 : i32
    %88 = tpu.dynamic_rotate %70 by %c127_i32_24 dim 1 : vector<8x128xf32>, i32 -> vector<8x128xf32>
    %89 = vector.extract_strided_slice %71 {offsets = [5, 0], sizes = [1, 128], strides = [1, 1]} : vector<9x128xf32> to vector<1x128xf32>
    %90 = vector.broadcast %89 : vector<1x128xf32> to vector<8x128xf32>
    %91 = arith.mulf %88, %90 : vector<8x128xf32>
    %c125_i32 = arith.constant 125 : i32
    %92 = tpu.dynamic_rotate %70 by %c125_i32 dim 1 : vector<8x128xf32>, i32 -> vector<8x128xf32>
    %93 = vector.extract_strided_slice %71 {offsets = [6, 0], sizes = [1, 128], strides = [1, 1]} : vector<9x128xf32> to vector<1x128xf32>
    %94 = vector.broadcast %93 : vector<1x128xf32> to vector<8x128xf32>
    %95 = arith.mulf %92, %94 : vector<8x128xf32>
    %c124_i32 = arith.constant 124 : i32
    %96 = tpu.dynamic_rotate %70 by %c124_i32 dim 1 : vector<8x128xf32>, i32 -> vector<8x128xf32>
    %97 = vector.extract_strided_slice %71 {offsets = [7, 0], sizes = [1, 128], strides = [1, 1]} : vector<9x128xf32> to vector<1x128xf32>
    %98 = vector.broadcast %97 : vector<1x128xf32> to vector<8x128xf32>
    %99 = arith.mulf %96, %98 : vector<8x128xf32>
    %c123_i32 = arith.constant 123 : i32
    %100 = tpu.dynamic_rotate %70 by %c123_i32 dim 1 : vector<8x128xf32>, i32 -> vector<8x128xf32>
    %101 = vector.extract_strided_slice %71 {offsets = [8, 0], sizes = [1, 128], strides = [1, 1]} : vector<9x128xf32> to vector<1x128xf32>
    %102 = vector.broadcast %101 : vector<1x128xf32> to vector<8x128xf32>
    %103 = arith.mulf %100, %102 : vector<8x128xf32>
    %104 = tpu.concatenate %75, %79, %83, %87, %70, %91, %95, %99, %103 in 0 : vector<8x128xf32>, vector<8x128xf32>, vector<8x128xf32>, vector<8x128xf32>, vector<8x128xf32>, vector<8x128xf32>, vector<8x128xf32>, vector<8x128xf32>, vector<8x128xf32> -> vector<72x128xf32>
    %c1 = arith.constant 1 : index
    %c0_25 = arith.constant 0 : index
    %c0_26 = arith.constant 0 : index
    %105 = vector.load %arg2[%c1, %c0_25, %c0_26] : memref<3x8x72xf32, #tpu.memory_space<vmem>>, vector<1x8x72xf32>
    %106 = vector.shape_cast %105 : vector<1x8x72xf32> to vector<8x72xf32>
    %cst_27 = arith.constant dense<0.000000e+00> : vector<8x128xf32>
    %107 = tpu.matmul %106, %104, %cst_27 {dimension_numbers = #tpu.dot_dimension_numbers<[1], [0], [0], [1], [0, 0, 1, 1], [], []>} : vector<8x72xf32>, vector<72x128xf32>, vector<8x128xf32> -> vector<8x128xf32>
    %cst_28 = arith.constant dense<0.000000e+00> : vector<8xf32>
    %108 = vector.multi_reduction <add>, %107, %cst_28 [1] : vector<8x128xf32> to vector<8xf32>
    %109 = vector.shape_cast %108 : vector<8xf32> to vector<8x1xf32>
    %cst_29 = arith.constant 6.250000e-02 : f32
    %110 = vector.broadcast %cst_29 : f32 to vector<8x1xf32>
    %111 = arith.mulf %109, %110 : vector<8x1xf32>
    %112 = arith.mulf %107, %107 : vector<8x128xf32>
    %cst_30 = arith.constant dense<0.000000e+00> : vector<8xf32>
    %113 = vector.multi_reduction <add>, %112, %cst_30 [1] : vector<8x128xf32> to vector<8xf32>
    %114 = vector.shape_cast %113 : vector<8xf32> to vector<8x1xf32>
    %cst_31 = arith.constant 6.250000e-02 : f32
    %115 = vector.broadcast %cst_31 : f32 to vector<8x1xf32>
    %116 = arith.mulf %114, %115 : vector<8x1xf32>
    %117 = arith.mulf %111, %111 : vector<8x1xf32>
    %118 = arith.subf %116, %117 : vector<8x1xf32>
    %cst_32 = arith.constant 0.000000e+00 : f32
    %119 = vector.broadcast %cst_32 : f32 to vector<8x1xf32>
    %120 = arith.maximumf %118, %119 : vector<8x1xf32>
    %121 = vector.broadcast %111 : vector<8x1xf32> to vector<8x128xf32>
    %122 = arith.subf %107, %121 : vector<8x128xf32>
    %cst_33 = arith.constant 9.99999974E-6 : f32
    %123 = vector.broadcast %cst_33 : f32 to vector<8x1xf32>
    %124 = arith.addf %120, %123 : vector<8x1xf32>
    %125 = math.rsqrt %124 : vector<8x1xf32>
    %126 = vector.broadcast %125 : vector<8x1xf32> to vector<8x128xf32>
    %127 = arith.mulf %122, %126 : vector<8x128xf32>
    %c1_34 = arith.constant 1 : index
    %c0_35 = arith.constant 0 : index
    %c0_36 = arith.constant 0 : index
    %128 = vector.load %arg4[%c1_34, %c0_35, %c0_36] : memref<3x8x1xf32, #tpu.memory_space<vmem>>, vector<1x8x1xf32>
    %129 = vector.shape_cast %128 : vector<1x8x1xf32> to vector<8x1xf32>
    %130 = vector.broadcast %129 : vector<8x1xf32> to vector<8x128xf32>
    %131 = arith.mulf %127, %130 : vector<8x128xf32>
    %c1_37 = arith.constant 1 : index
    %c0_38 = arith.constant 0 : index
    %c0_39 = arith.constant 0 : index
    %132 = vector.load %arg5[%c1_37, %c0_38, %c0_39] : memref<3x8x1xf32, #tpu.memory_space<vmem>>, vector<1x8x1xf32>
    %133 = vector.shape_cast %132 : vector<1x8x1xf32> to vector<8x1xf32>
    %134 = vector.broadcast %133 : vector<8x1xf32> to vector<8x128xf32>
    %135 = arith.addf %131, %134 : vector<8x128xf32>
    %136 = arith.truncf %135 : vector<8x128xf32> to vector<8x128xbf16>
    %137 = vector.extract_strided_slice %2 {offsets = [0, 256], sizes = [8, 128], strides = [1, 1]} : vector<8x384xf32> to vector<8x128xf32>
    %c0_40 = arith.constant 0 : index
    %c0_41 = arith.constant 0 : index
    %138 = vector.load %arg10[%c0_40, %c0_41] : memref<9x128xf32, #tpu.memory_space<vmem>>, vector<9x128xf32>
    %c3_i32_42 = arith.constant 3 : i32
    %139 = tpu.dynamic_rotate %137 by %c3_i32_42 dim 1 : vector<8x128xf32>, i32 -> vector<8x128xf32>
    %140 = vector.extract_strided_slice %138 {offsets = [0, 0], sizes = [1, 128], strides = [1, 1]} : vector<9x128xf32> to vector<1x128xf32>
    %141 = vector.broadcast %140 : vector<1x128xf32> to vector<8x128xf32>
    %142 = arith.mulf %139, %141 : vector<8x128xf32>
    %c2_i32 = arith.constant 2 : i32
    %143 = tpu.dynamic_rotate %137 by %c2_i32 dim 1 : vector<8x128xf32>, i32 -> vector<8x128xf32>
    %144 = vector.extract_strided_slice %138 {offsets = [1, 0], sizes = [1, 128], strides = [1, 1]} : vector<9x128xf32> to vector<1x128xf32>
    %145 = vector.broadcast %144 : vector<1x128xf32> to vector<8x128xf32>
    %146 = arith.mulf %143, %145 : vector<8x128xf32>
    %c1_i32_43 = arith.constant 1 : i32
    %147 = tpu.dynamic_rotate %137 by %c1_i32_43 dim 1 : vector<8x128xf32>, i32 -> vector<8x128xf32>
    %148 = vector.extract_strided_slice %138 {offsets = [2, 0], sizes = [1, 128], strides = [1, 1]} : vector<9x128xf32> to vector<1x128xf32>
    %149 = vector.broadcast %148 : vector<1x128xf32> to vector<8x128xf32>
    %150 = arith.mulf %147, %149 : vector<8x128xf32>
    %c1_i32_44 = arith.constant 1 : i32
    %151 = tpu.dynamic_rotate %137 by %c1_i32_44 dim 1 : vector<8x128xf32>, i32 -> vector<8x128xf32>
    %152 = vector.extract_strided_slice %138 {offsets = [3, 0], sizes = [1, 128], strides = [1, 1]} : vector<9x128xf32> to vector<1x128xf32>
    %153 = vector.broadcast %152 : vector<1x128xf32> to vector<8x128xf32>
    %154 = arith.mulf %151, %153 : vector<8x128xf32>
    %c127_i32_45 = arith.constant 127 : i32
    %155 = tpu.dynamic_rotate %137 by %c127_i32_45 dim 1 : vector<8x128xf32>, i32 -> vector<8x128xf32>
    %156 = vector.extract_strided_slice %138 {offsets = [5, 0], sizes = [1, 128], strides = [1, 1]} : vector<9x128xf32> to vector<1x128xf32>
    %157 = vector.broadcast %156 : vector<1x128xf32> to vector<8x128xf32>
    %158 = arith.mulf %155, %157 : vector<8x128xf32>
    %c127_i32_46 = arith.constant 127 : i32
    %159 = tpu.dynamic_rotate %137 by %c127_i32_46 dim 1 : vector<8x128xf32>, i32 -> vector<8x128xf32>
    %160 = vector.extract_strided_slice %138 {offsets = [6, 0], sizes = [1, 128], strides = [1, 1]} : vector<9x128xf32> to vector<1x128xf32>
    %161 = vector.broadcast %160 : vector<1x128xf32> to vector<8x128xf32>
    %162 = arith.mulf %159, %161 : vector<8x128xf32>
    %c126_i32 = arith.constant 126 : i32
    %163 = tpu.dynamic_rotate %137 by %c126_i32 dim 1 : vector<8x128xf32>, i32 -> vector<8x128xf32>
    %164 = vector.extract_strided_slice %138 {offsets = [7, 0], sizes = [1, 128], strides = [1, 1]} : vector<9x128xf32> to vector<1x128xf32>
    %165 = vector.broadcast %164 : vector<1x128xf32> to vector<8x128xf32>
    %166 = arith.mulf %163, %165 : vector<8x128xf32>
    %c125_i32_47 = arith.constant 125 : i32
    %167 = tpu.dynamic_rotate %137 by %c125_i32_47 dim 1 : vector<8x128xf32>, i32 -> vector<8x128xf32>
    %168 = vector.extract_strided_slice %138 {offsets = [8, 0], sizes = [1, 128], strides = [1, 1]} : vector<9x128xf32> to vector<1x128xf32>
    %169 = vector.broadcast %168 : vector<1x128xf32> to vector<8x128xf32>
    %170 = arith.mulf %167, %169 : vector<8x128xf32>
    %171 = tpu.concatenate %142, %146, %150, %154, %137, %158, %162, %166, %170 in 0 : vector<8x128xf32>, vector<8x128xf32>, vector<8x128xf32>, vector<8x128xf32>, vector<8x128xf32>, vector<8x128xf32>, vector<8x128xf32>, vector<8x128xf32>, vector<8x128xf32> -> vector<72x128xf32>
    %c2 = arith.constant 2 : index
    %c0_48 = arith.constant 0 : index
    %c0_49 = arith.constant 0 : index
    %172 = vector.load %arg2[%c2, %c0_48, %c0_49] : memref<3x8x72xf32, #tpu.memory_space<vmem>>, vector<1x8x72xf32>
    %173 = vector.shape_cast %172 : vector<1x8x72xf32> to vector<8x72xf32>
    %cst_50 = arith.constant dense<0.000000e+00> : vector<8x128xf32>
    %174 = tpu.matmul %173, %171, %cst_50 {dimension_numbers = #tpu.dot_dimension_numbers<[1], [0], [0], [1], [0, 0, 1, 1], [], []>} : vector<8x72xf32>, vector<72x128xf32>, vector<8x128xf32> -> vector<8x128xf32>
    %cst_51 = arith.constant dense<0.000000e+00> : vector<8xf32>
    %175 = vector.multi_reduction <add>, %174, %cst_51 [1] : vector<8x128xf32> to vector<8xf32>
    %176 = vector.shape_cast %175 : vector<8xf32> to vector<8x1xf32>
    %cst_52 = arith.constant 2.500000e-01 : f32
    %177 = vector.broadcast %cst_52 : f32 to vector<8x1xf32>
    %178 = arith.mulf %176, %177 : vector<8x1xf32>
    %179 = arith.mulf %174, %174 : vector<8x128xf32>
    %cst_53 = arith.constant dense<0.000000e+00> : vector<8xf32>
    %180 = vector.multi_reduction <add>, %179, %cst_53 [1] : vector<8x128xf32> to vector<8xf32>
    %181 = vector.shape_cast %180 : vector<8xf32> to vector<8x1xf32>
    %cst_54 = arith.constant 2.500000e-01 : f32
    %182 = vector.broadcast %cst_54 : f32 to vector<8x1xf32>
    %183 = arith.mulf %181, %182 : vector<8x1xf32>
    %184 = arith.mulf %178, %178 : vector<8x1xf32>
    %185 = arith.subf %183, %184 : vector<8x1xf32>
    %cst_55 = arith.constant 0.000000e+00 : f32
    %186 = vector.broadcast %cst_55 : f32 to vector<8x1xf32>
    %187 = arith.maximumf %185, %186 : vector<8x1xf32>
    %188 = vector.broadcast %178 : vector<8x1xf32> to vector<8x128xf32>
    %189 = arith.subf %174, %188 : vector<8x128xf32>
    %cst_56 = arith.constant 9.99999974E-6 : f32
    %190 = vector.broadcast %cst_56 : f32 to vector<8x1xf32>
    %191 = arith.addf %187, %190 : vector<8x1xf32>
    %192 = math.rsqrt %191 : vector<8x1xf32>
    %193 = vector.broadcast %192 : vector<8x1xf32> to vector<8x128xf32>
    %194 = arith.mulf %189, %193 : vector<8x128xf32>
    %c2_57 = arith.constant 2 : index
    %c0_58 = arith.constant 0 : index
    %c0_59 = arith.constant 0 : index
    %195 = vector.load %arg4[%c2_57, %c0_58, %c0_59] : memref<3x8x1xf32, #tpu.memory_space<vmem>>, vector<1x8x1xf32>
    %196 = vector.shape_cast %195 : vector<1x8x1xf32> to vector<8x1xf32>
    %197 = vector.broadcast %196 : vector<8x1xf32> to vector<8x128xf32>
    %198 = arith.mulf %194, %197 : vector<8x128xf32>
    %c2_60 = arith.constant 2 : index
    %c0_61 = arith.constant 0 : index
    %c0_62 = arith.constant 0 : index
    %199 = vector.load %arg5[%c2_60, %c0_61, %c0_62] : memref<3x8x1xf32, #tpu.memory_space<vmem>>, vector<1x8x1xf32>
    %200 = vector.shape_cast %199 : vector<1x8x1xf32> to vector<8x1xf32>
    %201 = vector.broadcast %200 : vector<8x1xf32> to vector<8x128xf32>
    %202 = arith.addf %198, %201 : vector<8x128xf32>
    %203 = arith.truncf %202 : vector<8x128xf32> to vector<8x128xbf16>
    %204 = tpu.concatenate %69, %136, %203 in 1 : vector<8x128xbf16>, vector<8x128xbf16>, vector<8x128xbf16> -> vector<8x384xbf16>
    %c0_63 = arith.constant 0 : index
    %c0_64 = arith.constant 0 : index
    %205 = vector.load %arg7[%c0_63, %c0_64] : memref<384x256xbf16, #tpu.memory_space<vmem>>, vector<384x256xbf16>
    %cst_65 = arith.constant dense<0.000000e+00> : vector<8x256xf32>
    %206 = tpu.matmul %204, %205, %cst_65 {dimension_numbers = #tpu.dot_dimension_numbers<[1], [0], [0], [1], [0, 0, 1, 1], [], []>} : vector<8x384xbf16>, vector<384x256xbf16>, vector<8x256xf32> -> vector<8x256xf32>
    %207 = arith.addf %0, %206 : vector<8x256xf32>
    %208 = math.absf %207 : vector<8x256xf32>
    %cst_66 = arith.constant 0.707106769 : f32
    %209 = vector.broadcast %cst_66 : f32 to vector<8x256xf32>
    %210 = arith.mulf %208, %209 : vector<8x256xf32>
    %cst_67 = arith.constant 0.327591091 : f32
    %211 = vector.broadcast %cst_67 : f32 to vector<8x256xf32>
    %212 = arith.mulf %211, %210 : vector<8x256xf32>
    %cst_68 = arith.constant 1.000000e+00 : f32
    %213 = vector.broadcast %cst_68 : f32 to vector<8x256xf32>
    %214 = arith.addf %213, %212 : vector<8x256xf32>
    %215 = tpu.reciprocal %214 {approx = true} : vector<8x256xf32> -> vector<8x256xf32>
    %cst_69 = arith.constant 1.06140542 : f32
    %216 = vector.broadcast %cst_69 : f32 to vector<8x256xf32>
    %217 = arith.mulf %216, %215 : vector<8x256xf32>
    %cst_70 = arith.constant -1.45315206 : f32
    %218 = vector.broadcast %cst_70 : f32 to vector<8x256xf32>
    %219 = arith.addf %217, %218 : vector<8x256xf32>
    %220 = arith.mulf %219, %215 : vector<8x256xf32>
    %cst_71 = arith.constant 1.42141378 : f32
    %221 = vector.broadcast %cst_71 : f32 to vector<8x256xf32>
    %222 = arith.addf %220, %221 : vector<8x256xf32>
    %223 = arith.mulf %222, %215 : vector<8x256xf32>
    %cst_72 = arith.constant -0.284496725 : f32
    %224 = vector.broadcast %cst_72 : f32 to vector<8x256xf32>
    %225 = arith.addf %223, %224 : vector<8x256xf32>
    %226 = arith.mulf %225, %215 : vector<8x256xf32>
    %cst_73 = arith.constant 0.254829586 : f32
    %227 = vector.broadcast %cst_73 : f32 to vector<8x256xf32>
    %228 = arith.addf %226, %227 : vector<8x256xf32>
    %229 = arith.mulf %228, %215 : vector<8x256xf32>
    %cst_74 = arith.constant 0.000000e+00 : f32
    %230 = vector.broadcast %cst_74 : f32 to vector<8x256xf32>
    %231 = arith.subf %230, %210 : vector<8x256xf32>
    %232 = arith.mulf %231, %210 : vector<8x256xf32>
    %233 = math.exp %232 : vector<8x256xf32>
    %234 = arith.mulf %229, %233 : vector<8x256xf32>
    %cst_75 = arith.constant 1.000000e+00 : f32
    %235 = vector.broadcast %cst_75 : f32 to vector<8x256xf32>
    %236 = arith.subf %235, %234 : vector<8x256xf32>
    %cst_76 = arith.constant 0.000000e+00 : f32
    %237 = vector.broadcast %cst_76 : f32 to vector<8x256xf32>
    %238 = arith.cmpf oge, %207, %237 : vector<8x256xf32>
    %cst_77 = arith.constant 0.000000e+00 : f32
    %239 = vector.broadcast %cst_77 : f32 to vector<8x256xf32>
    %240 = arith.subf %239, %236 : vector<8x256xf32>
    %241 = arith.select %238, %236, %240 : vector<8x256xi1>, vector<8x256xf32>
    %cst_78 = arith.constant 5.000000e-01 : f32
    %242 = vector.broadcast %cst_78 : f32 to vector<8x256xf32>
    %243 = arith.mulf %242, %207 : vector<8x256xf32>
    %cst_79 = arith.constant 1.000000e+00 : f32
    %244 = vector.broadcast %cst_79 : f32 to vector<8x256xf32>
    %245 = arith.addf %244, %241 : vector<8x256xf32>
    %246 = arith.mulf %243, %245 : vector<8x256xf32>
    %c0_80 = arith.constant 0 : index
    %c0_81 = arith.constant 0 : index
    %247 = vector.load %arg11[%c0_80, %c0_81] : memref<9x256xf32, #tpu.memory_space<vmem>>, vector<9x256xf32>
    %c17_i32 = arith.constant 17 : i32
    %248 = tpu.dynamic_rotate %246 by %c17_i32 dim 1 : vector<8x256xf32>, i32 -> vector<8x256xf32>
    %249 = vector.extract_strided_slice %247 {offsets = [0, 0], sizes = [1, 256], strides = [1, 1]} : vector<9x256xf32> to vector<1x256xf32>
    %250 = vector.broadcast %249 : vector<1x256xf32> to vector<8x256xf32>
    %251 = arith.mulf %248, %250 : vector<8x256xf32>
    %c16_i32 = arith.constant 16 : i32
    %252 = tpu.dynamic_rotate %246 by %c16_i32 dim 1 : vector<8x256xf32>, i32 -> vector<8x256xf32>
    %253 = vector.extract_strided_slice %247 {offsets = [1, 0], sizes = [1, 256], strides = [1, 1]} : vector<9x256xf32> to vector<1x256xf32>
    %254 = vector.broadcast %253 : vector<1x256xf32> to vector<8x256xf32>
    %255 = arith.mulf %252, %254 : vector<8x256xf32>
    %c15_i32 = arith.constant 15 : i32
    %256 = tpu.dynamic_rotate %246 by %c15_i32 dim 1 : vector<8x256xf32>, i32 -> vector<8x256xf32>
    %257 = vector.extract_strided_slice %247 {offsets = [2, 0], sizes = [1, 256], strides = [1, 1]} : vector<9x256xf32> to vector<1x256xf32>
    %258 = vector.broadcast %257 : vector<1x256xf32> to vector<8x256xf32>
    %259 = arith.mulf %256, %258 : vector<8x256xf32>
    %c1_i32_82 = arith.constant 1 : i32
    %260 = tpu.dynamic_rotate %246 by %c1_i32_82 dim 1 : vector<8x256xf32>, i32 -> vector<8x256xf32>
    %261 = vector.extract_strided_slice %247 {offsets = [3, 0], sizes = [1, 256], strides = [1, 1]} : vector<9x256xf32> to vector<1x256xf32>
    %262 = vector.broadcast %261 : vector<1x256xf32> to vector<8x256xf32>
    %263 = arith.mulf %260, %262 : vector<8x256xf32>
    %c255_i32 = arith.constant 255 : i32
    %264 = tpu.dynamic_rotate %246 by %c255_i32 dim 1 : vector<8x256xf32>, i32 -> vector<8x256xf32>
    %265 = vector.extract_strided_slice %247 {offsets = [5, 0], sizes = [1, 256], strides = [1, 1]} : vector<9x256xf32> to vector<1x256xf32>
    %266 = vector.broadcast %265 : vector<1x256xf32> to vector<8x256xf32>
    %267 = arith.mulf %264, %266 : vector<8x256xf32>
    %c241_i32 = arith.constant 241 : i32
    %268 = tpu.dynamic_rotate %246 by %c241_i32 dim 1 : vector<8x256xf32>, i32 -> vector<8x256xf32>
    %269 = vector.extract_strided_slice %247 {offsets = [6, 0], sizes = [1, 256], strides = [1, 1]} : vector<9x256xf32> to vector<1x256xf32>
    %270 = vector.broadcast %269 : vector<1x256xf32> to vector<8x256xf32>
    %271 = arith.mulf %268, %270 : vector<8x256xf32>
    %c240_i32 = arith.constant 240 : i32
    %272 = tpu.dynamic_rotate %246 by %c240_i32 dim 1 : vector<8x256xf32>, i32 -> vector<8x256xf32>
    %273 = vector.extract_strided_slice %247 {offsets = [7, 0], sizes = [1, 256], strides = [1, 1]} : vector<9x256xf32> to vector<1x256xf32>
    %274 = vector.broadcast %273 : vector<1x256xf32> to vector<8x256xf32>
    %275 = arith.mulf %272, %274 : vector<8x256xf32>
    %c239_i32 = arith.constant 239 : i32
    %276 = tpu.dynamic_rotate %246 by %c239_i32 dim 1 : vector<8x256xf32>, i32 -> vector<8x256xf32>
    %277 = vector.extract_strided_slice %247 {offsets = [8, 0], sizes = [1, 256], strides = [1, 1]} : vector<9x256xf32> to vector<1x256xf32>
    %278 = vector.broadcast %277 : vector<1x256xf32> to vector<8x256xf32>
    %279 = arith.mulf %276, %278 : vector<8x256xf32>
    %280 = tpu.concatenate %251, %255, %259, %263, %246, %267, %271, %275, %279 in 0 : vector<8x256xf32>, vector<8x256xf32>, vector<8x256xf32>, vector<8x256xf32>, vector<8x256xf32>, vector<8x256xf32>, vector<8x256xf32>, vector<8x256xf32>, vector<8x256xf32> -> vector<72x256xf32>
    %c0_83 = arith.constant 0 : index
    %c0_84 = arith.constant 0 : index
    %281 = vector.load %arg3[%c0_83, %c0_84] : memref<16x72xbf16, #tpu.memory_space<vmem>>, vector<16x72xbf16>
    %282 = arith.truncf %280 : vector<72x256xf32> to vector<72x256xbf16>
    %cst_85 = arith.constant dense<0.000000e+00> : vector<16x256xf32>
    %283 = tpu.matmul %281, %282, %cst_85 {dimension_numbers = #tpu.dot_dimension_numbers<[1], [0], [0], [1], [0, 0, 1, 1], [], []>} : vector<16x72xbf16>, vector<72x256xbf16>, vector<16x256xf32> -> vector<16x256xf32>
    %c0_86 = arith.constant 0 : index
    %c0_87 = arith.constant 0 : index
    %284 = vector.load %arg12[%c0_86, %c0_87] : memref<16x256xf32, #tpu.memory_space<vmem>>, vector<16x256xf32>
    tpu.vector_store %arg12[%c0_86, %c0_87], %283 {strides = array<i32>} : memref<16x256xf32, #tpu.memory_space<vmem>>, vector<16x256xf32>,
    return
  }
  func.func @transform_0(%arg0: i32) -> (i32, i32) {
    %c0_i32 = arith.constant 0 : i32
    %c0_i32_0 = arith.constant 0 : i32
    %c0_i32_1 = arith.constant 0 : i32
    return %c0_i32, %c0_i32_0 : i32, i32
  }
  func.func @transform_1(%arg0: i32) -> (i32, i32, i32) {
    %c0_i32 = arith.constant 0 : i32
    %c0_i32_0 = arith.constant 0 : i32
    %c0_i32_1 = arith.constant 0 : i32
    %c0_i32_2 = arith.constant 0 : i32
    return %c0_i32, %c0_i32_0, %c0_i32_1 : i32, i32, i32
  }
  func.func @transform_2(%arg0: i32) -> (i32, i32) {
    %c0_i32 = arith.constant 0 : i32
    %c0_i32_0 = arith.constant 0 : i32
    %c0_i32_1 = arith.constant 0 : i32
    return %c0_i32, %c0_i32_0 : i32, i32
  }
  func.func @transform_3(%arg0: i32) -> (i32, i32, i32) {
    %c0_i32 = arith.constant 0 : i32
    %c0_i32_0 = arith.constant 0 : i32
    %c0_i32_1 = arith.constant 0 : i32
    %c0_i32_2 = arith.constant 0 : i32
    return %c0_i32, %c0_i32_0, %c0_i32_1 : i32, i32, i32
  }
  func.func @transform_4(%arg0: i32) -> (i32, i32, i32) {
    %c0_i32 = arith.constant 0 : i32
    %c0_i32_0 = arith.constant 0 : i32
    %c0_i32_1 = arith.constant 0 : i32
    %c0_i32_2 = arith.constant 0 : i32
    return %c0_i32, %c0_i32_0, %c0_i32_1 : i32, i32, i32
  }
  func.func @transform_5(%arg0: i32) -> (i32, i32) {
    %c0_i32 = arith.constant 0 : i32
    %c0_i32_0 = arith.constant 0 : i32
    %c0_i32_1 = arith.constant 0 : i32
    return %c0_i32, %c0_i32_0 : i32, i32
  }
  func.func @transform_6(%arg0: i32) -> (i32, i32) {
    %c0_i32 = arith.constant 0 : i32
    %c0_i32_0 = arith.constant 0 : i32
    %c0_i32_1 = arith.constant 0 : i32
    return %c0_i32, %c0_i32_0 : i32, i32
  }
  func.func @transform_7(%arg0: i32) -> (i32, i32) {
    %c0_i32 = arith.constant 0 : i32
    %c0_i32_0 = arith.constant 0 : i32
    %c0_i32_1 = arith.constant 0 : i32
    return %c0_i32, %c0_i32_0 : i32, i32
  }
  func.func @transform_8(%arg0: i32) -> (i32, i32) {
    %c0_i32 = arith.constant 0 : i32
    %c0_i32_0 = arith.constant 0 : i32
    %c0_i32_1 = arith.constant 0 : i32
    return %c0_i32, %c0_i32_0 : i32, i32
  }
  func.func @transform_9(%arg0: i32) -> (i32, i32) {
    %c0_i32 = arith.constant 0 : i32
    %c0_i32_0 = arith.constant 0 : i32
    %c0_i32_1 = arith.constant 0 : i32
    return %c0_i32, %c0_i32_0 : i32, i32
  }
  func.func @transform_10(%arg0: i32) -> (i32, i32) {
    %c0_i32 = arith.constant 0 : i32
    %c0_i32_0 = arith.constant 0 : i32
    %c0_i32_1 = arith.constant 0 : i32
    return %c0_i32, %c0_i32_0 : i32, i32
  }
  func.func @transform_11(%arg0: i32) -> (i32, i32) {
    %c0_i32 = arith.constant 0 : i32
    %c0_i32_0 = arith.constant 0 : i32
    %c0_i32_1 = arith.constant 0 : i32
    return %c0_i32, %c0_i32_0 : i32, i32
  }
}

</mosaic_0001>

<bundles_post_ra>
// kernel: tile.33
= control target key start
LH: loop header
LB: loop body
LE: loop exit
PB: predicated region body
PF: predicated region fallthrough
CT: control target
= control target key end

     0   :  { %s22_s0 = inlined_call_operand.vmem [shape: f32[4], index: 0, kind: input, shape index: {}]   ;;  %s23_s1 = inlined_call_operand.vmem [shape: f32[2,4], index: 1, kind: output, shape index: {}]  }
   0x1   :  { %v4_v0 = vld [vmem:[%s22_s0] ss:$0 sm:$0xff] }
   0x2   :  { %5 = vst [vmem:[%s23_s1] sm:$0x3] %v4_v0 }

// kernel: tile.42
= control target key start
LH: loop header
LB: loop body
LE: loop exit
PB: predicated region body
PF: predicated region fallthrough
CT: control target
= control target key end

     0   :  { %vm8_vm0 = vcmask 31744   ;;  %vm14_vm1 = vcmask 64544   ;;  %s42_s0 = inlined_call_operand.vmem [shape: f32[2,4], index: 0, kind: input, shape index: {}]   ;;  %s43_s1 = inlined_call_operand.vmem [shape: f32[1,8,1], index: 1, kind: output, shape index: {}]  }
   0x1   :  { %v5_v0 = vld [vmem:[%s42_s0] sm:$0x3]  ;;  %s25_s0 = smov 4  }
   0x2   :  { %6 = vst [vmem:[#allocation1] sm:$0x3] %v5_v0 }
   0x9   :  { %v11_v1 = vld [vmem:[#allocation1 + $0x1] sm:$0x1]   ;;  %v7_v2 = vld [vmem:[#allocation1] sm:$0x1]  }
   0xa   :  { %12 = vrot.lane.b32.xlu0 %v11_v1, %s25_s0  ;;  %9 = vst.msk [vmem:[#allocation0] sm:$0x1] %vm8_vm0, %v7_v2  }
  0x7c   :  { %v13_v3 = vpop.permute.xlu0 %12  }
  0x7d   :  { %15 = vst.msk [vmem:[#allocation0] sm:$0x1] %vm14_vm1, %v13_v3  }
  0x84   :  { %v20_v4 = vld [vmem:[#allocation0] sm:$0x1] }
  0x85   :  { %23 = vst [vmem:[%s43_s1] sm:$0x1] %v20_v4 }

// kernel: deep_pool_layer.1
= control target key start
LH: loop header
LB: loop body
LE: loop exit
PB: predicated region body
PF: predicated region fallthrough
CT: control target
= control target key end

     0   :  { %s1716_s21 = smov 125   ;;  %s1718_s22 = smov 119   ;;  %vm1721_vm0 = vmmov 0   ;;  %vm337_vm1 = vcmask 588800   ;;  %vm1350_vm5 = vcmask 1043456   ;;  %s2541_s5 = inlined_call_operand.vmem [shape: f32[256,384], index: 5, kind: input, shape index: {}]   ;;  %s2542_s0 = inlined_call_operand.vmem [shape: f32[8,256], index: 0, kind: input, shape index: {}]   ;;  %s2543_s9 = inlined_call_operand.vmem [shape: f32[9,128], index: 9, kind: input, shape index: {}]   ;;  %s2544_s7 = inlined_call_operand.vmem [shape: f32[9,128], index: 7, kind: input, shape index: {}]   ;;  %s2545_s8 = inlined_call_operand.vmem [shape: f32[9,128], index: 8, kind: input, shape index: {}]   ;;  %s2546_s1 = inlined_call_operand.vmem [shape: f32[3,8,72], index: 1, kind: input, shape index: {}]   ;;  %s2547_s6 = inlined_call_operand.vmem [shape: bf16[384,256], index: 6, kind: input, shape index: {}]   ;;  %s2548_s3 = inlined_call_operand.vmem [shape: f32[3,8,1], index: 3, kind: input, shape index: {}]   ;;  %s2549_s4 = inlined_call_operand.vmem [shape: f32[3,8,1], index: 4, kind: input, shape index: {}]   ;;  %s2550_s2 = inlined_call_operand.vmem [shape: bf16[16,72], index: 2, kind: input, shape index: {}]   ;;  %s2551_s10 = inlined_call_operand.vmem [shape: f32[9,256], index: 10, kind: input, shape index: {}]   ;;  %s2552_s11 = inlined_call_operand.vmem [shape: f32[16,256], index: 11, kind: output, shape index: {}]  }
   0x1   :  { %v87_v0 = vld [vmem:[%s2541_s5 + $0x170] sm:$0xff]  ;;  %v86_v1 = vld [vmem:[%s2541_s5 + $0x168] sm:$0xff]  ;;  %v84_v2 = vld [vmem:[%s2541_s5 + $0x158] sm:$0xff]  ;;  %s1720_s23 = smov 120   ;;  %s1722_s24 = smov 126  }
   0x2   :  { %137 = vmatprep.subr.mxu0 %v87_v0  ;;  %v83_v3 = vld [vmem:[%s2541_s5 + $0x150] sm:$0xff]  ;;  %v81_v4 = vld [vmem:[%s2541_s5 + $0x140] sm:$0xff]  ;;  %v80_v5 = vld [vmem:[%s2541_s5 + $0x138] sm:$0xff]  ;;  %s1723_s25 = smov 1   ;;  %s1724_s26 = smov 7  }
   0x3   :  { %138 = vmatpush1.msra.mxu0 %v86_v1  ;;  %v78_v6 = vld [vmem:[%s2541_s5 + $0x128] sm:$0xff]  ;;  %v77_v7 = vld [vmem:[%s2541_s5 + $0x120] sm:$0xff]  ;;  %v75_v8 = vld [vmem:[%s2541_s5 + $0x110] sm:$0xff]  ;;  %s1725_s27 = smov 8   ;;  %s1726_s28 = smov 9  }
   0x4   :  { %139 = vmatprep.subr.mxu0 %v84_v2  ;;  %v74_v9 = vld [vmem:[%s2541_s5 + $0x108] sm:$0xff]  ;;  %v72_v10 = vld [vmem:[%s2541_s5 + $0xf8] sm:$0xff]  ;;  %v71_v12 = vld [vmem:[%s2541_s5 + $0xf0] sm:$0xff]  ;;  %s1727_s29 = smov 123   ;;  %s1728_s30 = smov 124  }
   0x5   :  { %140 = vmatpush1.msra.mxu0 %v83_v3  ;;  %v136_v11 = vld [vmem:[%s2541_s5 + $0x2f8] sm:$0xff]  ;;  %v133_v14 = vld [vmem:[%s2541_s5 + $0x2e0] sm:$0xff]  ;;  %v130_v18 = vld [vmem:[%s2541_s5 + $0x2c8] sm:$0xff]  ;;  %s1729_s12 = smov 3   ;;  %s1730_s13 = smov 2  }
   0x6   :  { %141 = vmatprep.subr.mxu0 %v81_v4  ;;  %1473 = vmatprep.subr.mxu1 %v136_v11  ;;  %v88_v13 = vld [vmem:[%s2541_s5 + $0x178] sm:$0xff]  ;;  %v69_v15 = vld [vmem:[%s2541_s5 + $0xe0] sm:$0xff]  ;;  %v82_v19 = vld [vmem:[%s2541_s5 + $0x148] sm:$0xff]  ;;  %s1731_s14 = smov 4   ;;  %s1732_s15 = smov 5  }
   0x7   :  { %142 = vmatpush1.msra.mxu0 %v80_v5  ;;  %1474 = vmatpush3.msra.mxu1 %v88_v13  ;;  %v85_v16 = vld [vmem:[%s2541_s5 + $0x160] sm:$0xff]  ;;  %v68_v17 = vld [vmem:[%s2541_s5 + $0xd8] sm:$0xff]  ;;  %v66_v20 = vld [vmem:[%s2541_s5 + $0xc8] sm:$0xff] }
   0x8   :  { %143 = vmatprep.subr.mxu0 %v78_v6  ;;  %1475 = vmatprep.subr.mxu1 %v133_v14  ;;  %v127_v21 = vld [vmem:[%s2541_s5 + $0x2b0] sm:$0xff]  ;;  %v65_v22 = vld [vmem:[%s2541_s5 + $0xc0] sm:$0xff]  ;;  %v124_v25 = vld [vmem:[%s2541_s5 + $0x298] sm:$0xff] }
   0x9   :  { %144 = vmatpush1.msra.mxu0 %v77_v7  ;;  %1476 = vmatpush3.msra.mxu1 %v85_v16  ;;  %v79_v23 = vld [vmem:[%s2541_s5 + $0x130] sm:$0xff]  ;;  %v62_v26 = vld [vmem:[%s2541_s5 + $0xa8] sm:$0xff]  ;;  %v76_v27 = vld [vmem:[%s2541_s5 + $0x118] sm:$0xff] }
   0xa   :  { %145 = vmatprep.subr.mxu0 %v75_v8  ;;  %1477 = vmatprep.subr.mxu1 %v130_v18  ;;  %v63_v24 = vld [vmem:[%s2541_s5 + $0xb0] sm:$0xff]  ;;  %v60_v28 = vld [vmem:[%s2541_s5 + $0x98] sm:$0xff]  ;;  %v121_v29 = vld [vmem:[%s2541_s5 + $0x280] sm:$0xff] }
   0xb   :  { %146 = vmatpush1.msra.mxu0 %v74_v9  ;;  %1478 = vmatpush3.msra.mxu1 %v82_v19  ;;  %v59_v30 = vld [vmem:[%s2541_s5 + $0x90] sm:$0xff]  ;;  %v73_v31 = vld [vmem:[%s2541_s5 + $0x100] sm:$0xff]  ;;  %v118_v33 = vld [vmem:[%s2541_s5 + $0x268] sm:$0xff] }
   0xc   :  { %147 = vmatprep.subr.mxu0 %v72_v10  ;;  %1479 = vmatprep.subr.mxu1 %v127_v21  ;;  %v57_v32 = vld [vmem:[%s2541_s5 + $0x80] sm:$0xff]  ;;  %v56_v34 = vld [vmem:[%s2541_s5 + $0x78] sm:$0xff]  ;;  %v70_v35 = vld [vmem:[%s2541_s5 + $0xe8] sm:$0xff] }
   0xd   :  { %148 = vmatpush1.msra.mxu0 %v71_v12  ;;  %1480 = vmatpush3.msra.mxu1 %v79_v23  ;;  %v54_v36 = vld [vmem:[%s2541_s5 + $0x68] sm:$0xff]  ;;  %v115_v37 = vld [vmem:[%s2541_s5 + $0x250] sm:$0xff]  ;;  %v53_v38 = vld [vmem:[%s2541_s5 + $0x60] sm:$0xff] }
   0xe   :  { %149 = vmatprep.subr.mxu0 %v69_v15  ;;  %1481 = vmatprep.subr.mxu1 %v124_v25  ;;  %v67_v39 = vld [vmem:[%s2541_s5 + $0xd0] sm:$0xff]  ;;  %v112_v41 = vld [vmem:[%s2541_s5 + $0x238] sm:$0xff]  ;;  %v50_v42 = vld [vmem:[%s2541_s5 + $0x48] sm:$0xff] }
   0xf   :  { %150 = vmatpush1.msra.mxu0 %v68_v17  ;;  %1482 = vmatpush3.msra.mxu1 %v76_v27  ;;  %v51_v40 = vld [vmem:[%s2541_s5 + $0x50] sm:$0xff]  ;;  %v64_v43 = vld [vmem:[%s2541_s5 + $0xb8] sm:$0xff]  ;;  %v109_v45 = vld [vmem:[%s2541_s5 + $0x220] sm:$0xff] }
  0x10   :  { %151 = vmatprep.subr.mxu0 %v66_v20  ;;  %1483 = vmatprep.subr.mxu1 %v121_v29  ;;  %v48_v44 = vld [vmem:[%s2541_s5 + $0x38] sm:$0xff]  ;;  %v47_v46 = vld [vmem:[%s2541_s5 + $0x30] sm:$0xff]  ;;  %v61_v47 = vld [vmem:[%s2541_s5 + $0xa0] sm:$0xff] }
  0x11   :  { %152 = vmatpush1.msra.mxu0 %v65_v22  ;;  %1484 = vmatpush3.msra.mxu1 %v73_v31  ;;  %v45_v48 = vld [vmem:[%s2541_s5 + $0x20] sm:$0xff]  ;;  %v106_v49 = vld [vmem:[%s2541_s5 + $0x208] sm:$0xff]  ;;  %v44_v50 = vld [vmem:[%s2541_s5 + $0x18] sm:$0xff] }
  0x12   :  { %153 = vmatprep.subr.mxu0 %v63_v24  ;;  %1485 = vmatprep.subr.mxu1 %v118_v33  ;;  %v58_v51 = vld [vmem:[%s2541_s5 + $0x88] sm:$0xff]  ;;  %v103_v53 = vld [vmem:[%s2541_s5 + $0x1f0] sm:$0xff]  ;;  %v41_v54 = vld [vmem:[%s2541_s5] sm:$0xff] }
  0x13   :  { %154 = vmatpush1.msra.mxu0 %v62_v26  ;;  %1486 = vmatpush3.msra.mxu1 %v70_v35  ;;  %v42_v52 = vld [vmem:[%s2541_s5 + $0x8] sm:$0xff]  ;;  %v55_v55 = vld [vmem:[%s2541_s5 + $0x70] sm:$0xff]  ;;  %v100_v57 = vld [vmem:[%s2541_s5 + $0x1d8] sm:$0xff] }
  0x14   :  { %155 = vmatprep.subr.mxu0 %v60_v28  ;;  %1487 = vmatprep.subr.mxu1 %v115_v37  ;;  %v135_v56 = vld [vmem:[%s2541_s5 + $0x2f0] sm:$0xff]  ;;  %v134_v58 = vld [vmem:[%s2541_s5 + $0x2e8] sm:$0xff]  ;;  %v52_v59 = vld [vmem:[%s2541_s5 + $0x58] sm:$0xff] }
  0x15   :  { %156 = vmatpush1.msra.mxu0 %v59_v30  ;;  %1488 = vmatpush3.msra.mxu1 %v67_v39  ;;  %v132_v60 = vld [vmem:[%s2541_s5 + $0x2d8] sm:$0xff]  ;;  %v97_v61 = vld [vmem:[%s2541_s5 + $0x1c0] sm:$0xff]  ;;  %v131_v62 = vld [vmem:[%s2541_s5 + $0x2d0] sm:$0xff] }
  0x16   :  { %157 = vmatprep.subr.mxu0 %v57_v32  ;;  %1489 = vmatprep.subr.mxu1 %v112_v41  ;;  %v49_v63 = vld [vmem:[%s2541_s5 + $0x40] sm:$0xff]  ;;  %v94_v1 = vld [vmem:[%s2541_s5 + $0x1a8] sm:$0xff]  ;;  %v128_v2 = vld [vmem:[%s2541_s5 + $0x2b8] sm:$0xff] }
  0x17   :  { %158 = vmatpush1.msra.mxu0 %v56_v34  ;;  %1490 = vmatpush3.msra.mxu1 %v64_v43  ;;  %v129_v0 = vld [vmem:[%s2541_s5 + $0x2c0] sm:$0xff]  ;;  %v46_v3 = vld [vmem:[%s2541_s5 + $0x28] sm:$0xff]  ;;  %v91_v5 = vld [vmem:[%s2541_s5 + $0x190] sm:$0xff]  ;;  %v1715_v34 = vmov 0.0   ;;  %v282_v43 = vlaneseq }
  0x18   :  { %159 = vmatprep.subr.mxu0 %v54_v36  ;;  %1491 = vmatprep.subr.mxu1 %v109_v45  ;;  %v126_v4 = vld [vmem:[%s2541_s5 + $0x2a8] sm:$0xff]  ;;  %v125_v6 = vld [vmem:[%s2541_s5 + $0x2a0] sm:$0xff]  ;;  %v43_v7 = vld [vmem:[%s2541_s5 + $0x10] sm:$0xff] }
  0x19   :  { %160 = vmatpush1.msra.mxu0 %v53_v38  ;;  %1492 = vmatpush3.msra.mxu1 %v61_v47  ;;  %v123_v8 = vld [vmem:[%s2541_s5 + $0x290] sm:$0xff]  ;;  %v2022_v9 = vld [vmem:[%s2542_s0 + $0x8] sm:$0xff]  ;;  %v2030_v11 = vld [vmem:[%s2542_s0] sm:$0xff]  ;;  %s1719_s0 = smov 127  }
  0x1a   :  { %161 = vmatprep.subr.mxu0 %v51_v40  ;;  %1493 = vmatprep.subr.mxu1 %v106_v49  ;;  %v122_v10 = vld [vmem:[%s2541_s5 + $0x288] sm:$0xff]  ;;  %v120_v12 = vld [vmem:[%s2541_s5 + $0x278] sm:$0xff]  ;;  %v119_v13 = vld [vmem:[%s2541_s5 + $0x270] sm:$0xff] }
  0x1b   :  { %162 = vmatpush1.msra.mxu0 %v50_v42  ;;  %1494 = vmatpush3.msra.mxu1 %v58_v51  ;;  %v117_v14 = vld [vmem:[%s2541_s5 + $0x260] sm:$0xff]  ;;  %v116_v15 = vld [vmem:[%s2541_s5 + $0x258] sm:$0xff]  ;;  %v114_v16 = vld [vmem:[%s2541_s5 + $0x248] sm:$0xff] }
  0x1c   :  { %163 = vmatprep.subr.mxu0 %v48_v44  ;;  %1495 = vmatprep.subr.mxu1 %v103_v53  ;;  %v113_v17 = vld [vmem:[%s2541_s5 + $0x240] sm:$0xff]  ;;  %v111_v18 = vld [vmem:[%s2541_s5 + $0x230] sm:$0xff]  ;;  %v110_v19 = vld [vmem:[%s2541_s5 + $0x228] sm:$0xff]  ;;  %v283_v44 = vshrl.u32 %v282_v43, 7 }
  0x1d   :  { %164 = vmatpush1.msra.mxu0 %v47_v46  ;;  %1496 = vmatpush3.msra.mxu1 %v55_v55  ;;  %v108_v20 = vld [vmem:[%s2541_s5 + $0x218] sm:$0xff]  ;;  %v107_v21 = vld [vmem:[%s2541_s5 + $0x210] sm:$0xff]  ;;  %v105_v22 = vld [vmem:[%s2541_s5 + $0x200] sm:$0xff] }
  0x1e   :  { %165 = vmatprep.subr.mxu0 %v45_v48  ;;  %1497 = vmatprep.subr.mxu1 %v100_v57  ;;  %v104_v23 = vld [vmem:[%s2541_s5 + $0x1f8] sm:$0xff]  ;;  %v102_v24 = vld [vmem:[%s2541_s5 + $0x1e8] sm:$0xff]  ;;  %v101_v25 = vld [vmem:[%s2541_s5 + $0x1e0] sm:$0xff]  ;;  %v2149_v45 = vsub.s32 7, %v283_v44  ;;  %v2154_v47 = vsub.s32 6, %v283_v44 }
  0x1f   :  { %166 = vmatpush1.msra.mxu0 %v44_v50  ;;  %1498 = vmatpush3.msra.mxu1 %v52_v59  ;;  %v99_v26 = vld [vmem:[%s2541_s5 + $0x1d0] sm:$0xff]  ;;  %v98_v27 = vld [vmem:[%s2541_s5 + $0x1c8] sm:$0xff]  ;;  %v96_v28 = vld [vmem:[%s2541_s5 + $0x1b8] sm:$0xff] }
  0x20   :  { %167 = vmatprep.subr.mxu0 %v42_v52  ;;  %1499 = vmatprep.subr.mxu1 %v97_v61  ;;  %v95_v29 = vld [vmem:[%s2541_s5 + $0x1b0] sm:$0xff]  ;;  %v93_v30 = vld [vmem:[%s2541_s5 + $0x1a0] sm:$0xff]  ;;  %v92_v31 = vld [vmem:[%s2541_s5 + $0x198] sm:$0xff]  ;;  %v2159_v52 = vsub.s32 5, %v283_v44  ;;  %v2172_v61 = vsub.s32 3, %v283_v44 }
  0x21   :  { %168 = vmatpush1.msra.mxu0 %v41_v54  ;;  %1500 = vmatpush3.msra.mxu1 %v49_v63  ;;  %v90_v32 = vld [vmem:[%s2541_s5 + $0x188] sm:$0xff]  ;;  %v89_v33 = vld [vmem:[%s2541_s5 + $0x180] sm:$0xff]  ;;  %s1717_s5 = smov 121   ;;  %v2174_v63 = vsub.s32 2, %v283_v44 }
  0x22   :  { %169 = vmatprep.subr.mxu0 %v135_v56  ;;  %1501 = vmatprep.subr.mxu1 %v94_v1  ;;  %v1415_v40 = vld [vmem:[%s2543_s9 + $0x8] ss:$0 sm:$0xff]  ;;  %v278_v48 = vld [vmem:[%s2544_s7] sm:$0xff] }
  0x23   :  { %170 = vmatpush2.msra.mxu0 %v134_v58  ;;  %1502 = vmatpush3.msra.mxu1 %v46_v3  ;;  %v1408_v46 = vld [vmem:[%s2544_s7 + $0x8] ss:$0 sm:$0xff]  ;;  %v327_v53 = vrot.slane %v278_v48, %v2149_v45  ;;  %v2165_v54 = vld [vmem:[%s2543_s9] sm:$0xff]  ;;  %v320_v55 = vrot.slane %v278_v48, %v2154_v47  ;;  %v313_v58 = vrot.slane %v278_v48, %v2159_v52  ;;  %s1737_s7 = smov 15   ;;  %s1738_s9 = smov 17  }
  0x24   :  { %171 = vmatprep.subr.mxu0 %v132_v60  ;;  %1503 = vmatprep.subr.mxu1 %v91_v5  ;;  %v649_v60 = vrot.slane %v2165_v54, %v2149_v45  ;;  %v2178_v5 = vsub.s32 1, %v283_v44 }
  0x25   :  { %172 = vmatpush2.msra.mxu0 %v131_v62  ;;  %1504 = vmatpush3.msra.mxu1 %v43_v7  ;;  %v2182_v7 = vsub.s32 0, %v283_v44 }
  0x26   :  { %173 = vmatprep.subr.mxu0 %v129_v0  ;;  %272 = vmatprep.mubr.f32.mxu1 %v2022_v9 }
  0x27   :  { %174 = vmatpush2.msra.mxu0 %v128_v2  ;;  %273 = vmatmul.mubr.f32.vlgmr.msra.gmra.mxu1 %v2030_v11 }
  0x28   :  { %175 = vmatprep.subr.mxu0 %v126_v4  ;;  %201 = vmatprep.mubr.f32.mxu0 %v2022_v9  ;;  %v306_v4 = vrot.slane %v278_v48, %v2172_v61 }
  0x29   :  { %176 = vmatpush2.msra.mxu0 %v125_v6  ;;  %1538 = vmatprep.subr.mxu1 %v1715_v34  ;;  %v299_v6 = vrot.slane %v278_v48, %v2174_v63 }
  0x2a   :  { %177 = vmatprep.subr.mxu0 %v123_v8  ;;  %1556 = vmatprep.mubr.msk.f32.mxu1 %vm1721_vm0, %v1715_v34 }
  0x2b   :  { %178 = vmatpush2.msra.mxu0 %v122_v10 }
  0x2c   :  { %179 = vmatprep.subr.mxu0 %v120_v12 }
  0x2d   :  { %180 = vmatpush2.msra.mxu0 %v119_v13  ;;  %v292_v13 = vrot.slane %v278_v48, %v2178_v5 }
  0x2e   :  { %181 = vmatprep.subr.mxu0 %v117_v14 }
  0x2f   :  { %182 = vmatpush2.msra.mxu0 %v116_v15  ;;  %v285_v15 = vrot.slane %v278_v48, %v2182_v7 }
  0x30   :  { %183 = vmatprep.subr.mxu0 %v114_v16 }
  0x31   :  { %184 = vmatpush2.msra.mxu0 %v113_v17  ;;  %v2194_v17 = vld [vmem:[%s2545_s8] sm:$0xff] }
  0x32   :  { %185 = vmatprep.subr.mxu0 %v111_v18  ;;  %v461_v48 = vrot.slane %v2194_v17, %v2174_v63 }
  0x33   :  { %186 = vmatpush2.msra.mxu0 %v110_v19 }
  0x34   :  { %187 = vmatprep.subr.mxu0 %v108_v20  ;;  %v642_v20 = vrot.slane %v2165_v54, %v2154_v47 }
  0x35   :  { %188 = vmatpush2.msra.mxu0 %v107_v21  ;;  %v1410_v21 = vld [vmem:[%s2545_s8 + $0x8] ss:$0 sm:$0xff] }
  0x36   :  { %189 = vmatprep.subr.mxu0 %v105_v22 }
  0x37   :  { %190 = vmatpush2.msra.mxu0 %v104_v23  ;;  %v637_v23 = vrot.slane %v2165_v54, %v2159_v52 }
  0x38   :  { %191 = vmatprep.subr.mxu0 %v102_v24  ;;  %v489_v24 = vrot.slane %v2194_v17, %v2149_v45 }
  0x39   :  { %192 = vmatpush2.msra.mxu0 %v101_v25  ;;  %v336_v25 = vld [vmem:[%s2546_s1] sm:$0xff] }
  0x3a   :  { %193 = vmatprep.subr.mxu0 %v99_v26 }
  0x3b   :  { %194 = vmatpush2.msra.mxu0 %v98_v27 }
  0x3c   :  { %195 = vmatprep.subr.mxu0 %v96_v28 }
  0x3d   :  { %196 = vmatpush2.msra.mxu0 %v95_v29 }
  0x3e   :  { %197 = vmatprep.subr.mxu0 %v93_v30  ;;  %v482_v30 = vrot.slane %v2194_v17, %v2154_v47 }
  0x3f   :  { %198 = vmatpush2.msra.mxu0 %v92_v31 }
  0x40   :  { %199 = vmatprep.subr.mxu0 %v90_v32 }
  0x41   :  { %200 = vmatpush2.msra.mxu0 %v89_v33 }
  0x42   :  { %202 = vmatmul.mubr.f32.vlgmr.msra.gmra.mxu0 %v2030_v11  ;;  %1580 = vmatprep.subr.mxu0 %v1715_v34 }
  0x43   :  { %1598 = vmatprep.mubr.msk.f32.mxu0 %vm1721_vm0, %v1715_v34 }
  0xe7   :  { %v1505_v35 = vpop.f32.mrf.mxu1 }
  0xe9   :  { %v1506_v36 = vpop.f32.mrf.mxu1 }
  0xea   :  { %v2104_v37 = vadd.f32 %v1506_v36, %v1505_v35 }
  0xec   :  { %651 = vrot.lane.b32.xlu1 %v2104_v37, %s1716_s21 }
 0x102   :  { %v2108_v38 = vpop.f32.mrf.mxu0 }
 0x103   :  { %315 = vrot.lane.b32.xlu1 %v2108_v38, %s1717_s5  ;;  %329 = vrot.lane.b32.xlu0 %v2108_v38, %s1718_s22  ;;  %s1735_s5 = smov 111   ;;  %s1736_s22 = smov 113  }
 0x104   :  { %v2124_v39 = vpop.f32.mrf.mxu0 }
 0x107   :  { %308 = vrot.lane.b32.xlu1 %v2108_v38, %s1719_s0  ;;  %322 = vrot.lane.b32.xlu0 %v2108_v38, %s1720_s23  ;;  %s1739_s23 = smov 16  }
 0x10b   :  { %644 = vrot.lane.b32.xlu1 %v2104_v37, %s1722_s24  ;;  %301 = vrot.lane.b32.xlu0 %v2108_v38, %s1723_s25 }
 0x10f   :  { %294 = vrot.lane.b32.xlu1 %v2108_v38, %s1724_s26  ;;  %287 = vrot.lane.b32.xlu0 %v2108_v38, %s1725_s27 }
 0x113   :  { %280 = vrot.lane.b32.xlu1 %v2108_v38, %s1726_s28  ;;  %491 = vrot.lane.b32.xlu0 %v2124_v39, %s1727_s29 }
 0x117   :  { %632 = vrot.lane.b32.xlu1 %v2104_v37, %s1719_s0  ;;  %484 = vrot.lane.b32.xlu0 %v2124_v39, %s1728_s30 }
 0x11b   :  { %463 = vrot.lane.b32.xlu1 %v2124_v39, %s1723_s25  ;;  %477 = vrot.lane.b32.xlu0 %v2124_v39, %s1716_s21 }
 0x11f   :  { %456 = vrot.lane.b32.xlu1 %v2124_v39, %s1729_s12  ;;  %470 = vrot.lane.b32.xlu0 %v2124_v39, %s1719_s0 }
 0x123   :  { %613 = vrot.lane.b32.xlu1 %v2104_v37, %s1730_s13  ;;  %620 = vrot.lane.b32.xlu0 %v2104_v37, %s1723_s25 }
 0x127   :  { %606 = vrot.lane.b32.xlu1 %v2104_v37, %s1729_s12  ;;  %449 = vrot.lane.b32.xlu0 %v2124_v39, %s1731_s14 }
 0x12b   :  { %442 = vrot.lane.b32.xlu0 %v2124_v39, %s1732_s15 }
 0x15e   :  { %v652_v41 = vpop.permute.xlu1 %651 }
 0x15f   :  { %v657_v42 = vmul.f32 %v1415_v40, %v652_v41 }
 0x161   :  { %1581 = vmatpush3.msra.mxu0 %v657_v42  ;;  %v468_v42 = vrot.slane %v2194_v17, %v2172_v61 }
 0x162   :  { %1582 = vmatprep.subr.mxu0 %v1715_v34 }
 0x175   :  { %v316_v49 = vpop.permute.xlu1 %315  ;;  %v330_v50 = vpop.permute.xlu0 %329 }
 0x176   :  { %v335_v51 = vmul.f32 %v1408_v46, %v330_v50  ;;  %v321_v62 = vmul.f32 %v320_v55, %v316_v49  ;;  %v630_v46 = vrot.slane %v2165_v54, %v2172_v61 }
 0x178   :  { %1539 = vmatpush3.msra.mxu1 %v335_v51 }
 0x179   :  { %v309_v56 = vpop.permute.xlu1 %308  ;;  %v323_v57 = vpop.permute.xlu0 %322  ;;  %1540 = vmatprep.subr.mxu1 %v1715_v34 }
 0x17a   :  { %v328_v59 = vmul.f32 %v327_v53, %v323_v57  ;;  %v314_v2 = vmul.f32 %v313_v58, %v309_v56  ;;  %v618_v53 = vrot.slane %v2165_v54, %v2178_v5  ;;  %v454_v56 = vrot.slane %v2194_v17, %v2178_v5 }
 0x17c   :  { %1541 = vmatpush3.msra.mxu1 %v328_v59  ;;  %v611_v59 = vrot.slane %v2165_v54, %v2182_v7 }
 0x17d   :  { %v645_v0 = vpop.permute.xlu1 %644  ;;  %1542 = vmatprep.subr.mxu1 %v1715_v34  ;;  %v302_v1 = vpop.permute.xlu0 %301 }
 0x17e   :  { %v650_v3 = vmul.f32 %v649_v60, %v645_v0  ;;  %1543 = vmatpush3.msra.mxu1 %v321_v62  ;;  %v307_v12 = vmul.f32 %v306_v4, %v302_v1  ;;  %v447_v1 = vrot.slane %v2194_v17, %v2182_v7 }
 0x17f   :  { %1544 = vmatprep.subr.mxu1 %v1715_v34 }
 0x180   :  { %1545 = vmatpush3.msra.mxu1 %v314_v2  ;;  %1583 = vmatpush3.msra.mxu0 %v650_v3 }
 0x181   :  { %v295_v8 = vpop.permute.xlu1 %294  ;;  %1546 = vmatprep.subr.mxu1 %v1715_v34  ;;  %v288_v10 = vpop.permute.xlu0 %287  ;;  %1584 = vmatprep.subr.mxu0 %v1715_v34 }
 0x182   :  { %1547 = vmatpush3.msra.mxu1 %v2108_v38  ;;  %v300_v14 = vmul.f32 %v299_v6, %v295_v8  ;;  %v293_v19 = vmul.f32 %v292_v13, %v288_v10  ;;  %v475_v38 = vrot.slane %v2194_v17, %v2159_v52  ;;  %v1411_v6 = vld [vmem:[%s2546_s1 + $0x8] sm:$0xff]  ;;  %v1733_v8 = vmov 0   ;;  %v1630_v10 = vld [vmem:[%s2547_s6 + $0x74] ss:$8 sps:$4 sm:$0xff]  }
 0x183   :  { %1548 = vmatprep.subr.mxu1 %v1715_v34  ;;  %1626 = vset.pattern.permute.xlu1 %v1733_v8  ;;  %v1636_v17 = vld [vmem:[%s2547_s6 + $0x54] ss:$8 sps:$4 sm:$0xff]  }
 0x184   :  { %1549 = vmatpush3.msra.mxu1 %v307_v12  ;;  %1627 = vset.pattern.permute.xlu0 %v1733_v8 }
 0x185   :  { %v281_v16 = vpop.permute.xlu1 %280  ;;  %1550 = vmatprep.subr.mxu1 %v1715_v34  ;;  %v492_v18 = vpop.permute.xlu0 %491 }
 0x186   :  { %1551 = vmatpush3.msra.mxu1 %v300_v14  ;;  %v286_v22 = vmul.f32 %v285_v15, %v281_v16  ;;  %v497_v28 = vmul.f32 %v1410_v21, %v492_v18  ;;  %v1633_v15 = vld [vmem:[%s2547_s6 + $0x64] ss:$8 sps:$4 sm:$0xff]   ;;  %v1631_v16 = vld [vmem:[%s2547_s6 + $0x60] ss:$8 sps:$4 sm:$0xff]   ;;  %v1634_v18 = vld [vmem:[%s2547_s6 + $0x50] ss:$8 sps:$4 sm:$0xff]  }
 0x187   :  { %1552 = vmatprep.subr.mxu1 %v1715_v34  ;;  %v1413_v21 = vld [vmem:[%s2548_s3 + $0x8] sm:$0xff] }
 0x188   :  { %1553 = vmatpush3.msra.mxu1 %v293_v19  ;;  %v1639_v19 = vld [vmem:[%s2547_s6 + $0x44] ss:$8 sps:$4 sm:$0xff]  }
 0x189   :  { %v633_v26 = vpop.permute.xlu1 %632  ;;  %1554 = vmatprep.subr.mxu1 %v1715_v34  ;;  %v485_v27 = vpop.permute.xlu0 %484 }
 0x18a   :  { %v643_v29 = vmul.f32 %v642_v20, %v633_v26  ;;  %1555 = vmatpush3.msra.mxu1 %v286_v22  ;;  %v638_v31 = vmul.f32 %v637_v23, %v633_v26  ;;  %v490_v32 = vmul.f32 %v489_v24, %v485_v27  ;;  %v1637_v20 = vld [vmem:[%s2547_s6 + $0x40] ss:$8 sps:$4 sm:$0xff]   ;;  %v1642_v23 = vld [vmem:[%s2547_s6 + $0x34] ss:$8 sps:$4 sm:$0xff]   ;;  %v1640_v24 = vld [vmem:[%s2547_s6 + $0x30] ss:$8 sps:$4 sm:$0xff]  }
 0x18b   :  { %1557 = vmatmul.mubr.msk.f32.vlgmr.msra.gmra.mxu1 %vm337_vm1, %v336_v25  ;;  %1559 = vmatprep.subr.mxu1 %v1715_v34  ;;  %v1418_v27 = vld [vmem:[%s2548_s3 + $0x10] sm:$0xff] }
 0x18c   :  { %1560 = vmatpush3.msra.mxu1 %v497_v28  ;;  %1585 = vmatpush3.msra.mxu0 %v643_v29  ;;  %v1643_v28 = vld [vmem:[%s2547_s6 + $0x20] ss:$8 sps:$4 sm:$0xff]   ;;  %v1645_v29 = vld [vmem:[%s2547_s6 + $0x24] ss:$8 sps:$4 sm:$0xff]  }
 0x18d   :  { %1586 = vmatprep.subr.mxu0 %v1715_v34  ;;  %v464_v33 = vpop.permute.xlu1 %463  ;;  %1561 = vmatprep.subr.mxu1 %v1715_v34  ;;  %v478_v35 = vpop.permute.xlu0 %477 }
 0x18e   :  { %v483_v36 = vmul.f32 %v482_v30, %v478_v35  ;;  %1562 = vmatpush3.msra.mxu1 %v490_v32  ;;  %1587 = vmatpush3.msra.mxu0 %v638_v31  ;;  %v469_v51 = vmul.f32 %v468_v42, %v464_v33  ;;  %v1648_v31 = vld [vmem:[%s2547_s6 + $0x14] ss:$8 sps:$4 sm:$0xff]   ;;  %v1414_v33 = vld [vmem:[%s2549_s4 + $0x8] sm:$0xff]  ;;  %v1646_v35 = vld [vmem:[%s2547_s6 + $0x10] ss:$8 sps:$4 sm:$0xff]  }
 0x18f   :  { %1563 = vmatprep.subr.mxu1 %v1715_v34  ;;  %1588 = vmatprep.subr.mxu0 %v1715_v34  ;;  %v1419_v42 = vld [vmem:[%s2549_s4 + $0x10] sm:$0xff] }
 0x190   :  { %1564 = vmatpush3.msra.mxu1 %v483_v36  ;;  %1589 = vmatpush3.msra.mxu0 %v2104_v37  ;;  %v625_v37 = vrot.slane %v2165_v54, %v2174_v63  ;;  %v1416_v54 = vld [vmem:[%s2546_s1 + $0x10] sm:$0xff] }
 0x191   :  { %v457_v40 = vpop.permute.xlu1 %456  ;;  %v471_v41 = vpop.permute.xlu0 %470  ;;  %1565 = vmatprep.subr.mxu1 %v1715_v34  ;;  %1590 = vmatprep.subr.mxu0 %v1715_v34 }
 0x192   :  { %v476_v44 = vmul.f32 %v475_v38, %v471_v41  ;;  %1577 = vmatprep.mubr.msk.f32.mxu1 %vm1721_vm0, %v1715_v34  ;;  %v462_v57 = vmul.f32 %v461_v48, %v457_v40  ;;  %v432_v38 = vld [vmem:[%s2549_s4] sm:$0xff]  ;;  %v1657_v48 = vld [vmem:[%s2547_s6 + $0x174] ss:$8 sps:$4 sm:$0xff]  }
 0x193   :  { %v1651_v40 = vld [vmem:[%s2547_s6 + $0x4] ss:$8 sps:$4 sm:$0xff]   ;;  %v1649_v41 = vld [vmem:[%s2547_s6] ss:$8 sps:$4 sm:$0xff]  }
 0x194   :  { %1566 = vmatpush3.msra.mxu1 %v476_v44  ;;  %v1654_v44 = vld [vmem:[%s2547_s6 + $0xf4] ss:$8 sps:$4 sm:$0xff]  }
 0x195   :  { %v614_v49 = vpop.permute.xlu1 %613  ;;  %1567 = vmatprep.subr.mxu1 %v1715_v34  ;;  %v621_v50 = vpop.permute.xlu0 %620 }
 0x196   :  { %v631_v55 = vmul.f32 %v630_v46, %v621_v50  ;;  %1568 = vmatpush3.msra.mxu1 %v2124_v39  ;;  %v626_v58 = vmul.f32 %v625_v37, %v621_v50  ;;  %v619_v0 = vmul.f32 %v618_v53, %v614_v49  ;;  %v1652_v46 = vld [vmem:[%s2547_s6 + $0xf0] ss:$8 sps:$4 sm:$0xff]   ;;  %v1660_v49 = vld [vmem:[%s2547_s6 + $0xe4] ss:$8 sps:$4 sm:$0xff]   ;;  %v1658_v50 = vld [vmem:[%s2547_s6 + $0xe0] ss:$8 sps:$4 sm:$0xff]  }
 0x197   :  { %1569 = vmatprep.subr.mxu1 %v1715_v34  ;;  %v1655_v37 = vld [vmem:[%s2547_s6 + $0x170] ss:$8 sps:$4 sm:$0xff]   ;;  %v1661_v53 = vld [vmem:[%s2547_s6 + $0x160] ss:$8 sps:$4 sm:$0xff]  }
 0x198   :  { %1570 = vmatpush3.msra.mxu1 %v469_v51  ;;  %1591 = vmatpush3.msra.mxu0 %v631_v55  ;;  %v1663_v51 = vld [vmem:[%s2547_s6 + $0x164] ss:$8 sps:$4 sm:$0xff]   ;;  %v1666_v55 = vld [vmem:[%s2547_s6 + $0xd4] ss:$8 sps:$4 sm:$0xff]  }
 0x199   :  { %v607_v60 = vpop.permute.xlu1 %606  ;;  %1571 = vmatprep.subr.mxu1 %v1715_v34  ;;  %1592 = vmatprep.subr.mxu0 %v1715_v34  ;;  %v450_v62 = vpop.permute.xlu0 %449 }
 0x19a   :  { %v455_v39 = vmul.f32 %v454_v56, %v450_v62  ;;  %1572 = vmatpush3.msra.mxu1 %v462_v57  ;;  %1593 = vmatpush3.msra.mxu0 %v626_v58  ;;  %v612_v2 = vmul.f32 %v611_v59, %v607_v60  ;;  %v1664_v56 = vld [vmem:[%s2547_s6 + $0xd0] ss:$8 sps:$4 sm:$0xff]   ;;  %v1669_v57 = vld [vmem:[%s2547_s6 + $0x154] ss:$8 sps:$4 sm:$0xff]   ;;  %v1672_v59 = vld [vmem:[%s2547_s6 + $0xc4] ss:$8 sps:$4 sm:$0xff]  }
 0x19b   :  { %1573 = vmatprep.subr.mxu1 %v1715_v34  ;;  %1594 = vmatprep.subr.mxu0 %v1715_v34  ;;  %v1667_v58 = vld [vmem:[%s2547_s6 + $0x150] ss:$8 sps:$4 sm:$0xff]   ;;  %v1670_v60 = vld [vmem:[%s2547_s6 + $0xc0] ss:$8 sps:$4 sm:$0xff]   ;;  %v1675_v62 = vld [vmem:[%s2547_s6 + $0x144] ss:$8 sps:$4 sm:$0xff]  }
 0x19c   :  { %1574 = vmatpush3.msra.mxu1 %v455_v39  ;;  %1595 = vmatpush3.msra.mxu0 %v619_v0  ;;  %v425_v0 = vld [vmem:[%s2548_s3] sm:$0xff] }
 0x19d   :  { %1596 = vmatprep.subr.mxu0 %v1715_v34  ;;  %v443_v3 = vpop.permute.xlu0 %442  ;;  %1575 = vmatprep.subr.mxu1 %v1715_v34  ;;  %v1628_v34 = vld [vmem:[%s2547_s6 + $0x70] ss:$8 sps:$4 sm:$0xff]   ;;  %v1673_v39 = vld [vmem:[%s2547_s6 + $0x140] ss:$8 sps:$4 sm:$0xff]  }
 0x19e   :  { %v448_v4 = vmul.f32 %v447_v1, %v443_v3  ;;  %1597 = vmatpush3.msra.mxu0 %v612_v2  ;;  %v1678_v1 = vld [vmem:[%s2547_s6 + $0xb4] ss:$8 sps:$4 sm:$0xff]   ;;  %v1676_v2 = vld [vmem:[%s2547_s6 + $0xb0] ss:$8 sps:$4 sm:$0xff]  }
 0x19f   :  { %1599 = vmatmul.mubr.msk.f32.vlgmr.msra.gmra.mxu0 %vm337_vm1, %v1416_v54  ;;  %1093 = vmatprep.subr.bf16.mxu0 %v1657_v48  ;;  %v1681_v54 = vld [vmem:[%s2547_s6 + $0x134] ss:$8 sps:$4 sm:$0xff]   ;;  %v1679_v3 = vld [vmem:[%s2547_s6 + $0x130] ss:$8 sps:$4 sm:$0xff]  }
 0x1a0   :  { %1576 = vmatpush3.msra.mxu1 %v448_v4  ;;  %1125 = vmatprep.mubr.bf16.mxu0 %v1733_v8  ;;  %v1684_v4 = vld [vmem:[%s2547_s6 + $0xa4] ss:$8 sps:$4 sm:$0xff]  }
 0x1a1   :  { %1578 = vmatmul.mubr.msk.f32.vlgmr.msra.gmra.mxu1 %vm337_vm1, %v1411_v6  ;;  %1052 = vmatprep.subr.bf16.mxu1 %v1630_v10  ;;  %v1682_v6 = vld [vmem:[%s2547_s6 + $0xa0] ss:$8 sps:$4 sm:$0xff]  }
 0x1a2   :  { %1053 = vmatpush1.bf16.msra.mxu1 %v1628_v34  ;;  %1094 = vmatpush1.bf16.msra.mxu0 %v1655_v37  ;;  %v1687_v34 = vld [vmem:[%s2547_s6 + $0x124] ss:$8 sps:$4 sm:$0xff]   ;;  %v1685_v10 = vld [vmem:[%s2547_s6 + $0x120] ss:$8 sps:$4 sm:$0xff]  }
 0x1a3   :  { %1054 = vmatprep.subr.bf16.mxu1 %v1633_v15  ;;  %1095 = vmatprep.subr.bf16.mxu0 %v1663_v51  ;;  %v1693_v15 = vld [vmem:[%s2547_s6 + $0x114] ss:$8 sps:$4 sm:$0xff]  }
 0x1a6   :  { %1055 = vmatpush1.bf16.msra.mxu1 %v1631_v16  ;;  %1096 = vmatpush1.bf16.msra.mxu0 %v1661_v53  ;;  %v1691_v16 = vld [vmem:[%s2547_s6 + $0x110] ss:$8 sps:$4 sm:$0xff]  }
 0x1a7   :  { %1056 = vmatprep.subr.bf16.mxu1 %v1636_v17  ;;  %1097 = vmatprep.subr.bf16.mxu0 %v1669_v57  ;;  %v1696_v17 = vld [vmem:[%s2547_s6 + $0x84] ss:$8 sps:$4 sm:$0xff]  }
 0x1aa   :  { %1057 = vmatpush1.bf16.msra.mxu1 %v1634_v18  ;;  %1098 = vmatpush1.bf16.msra.mxu0 %v1667_v58  ;;  %v1694_v18 = vld [vmem:[%s2547_s6 + $0x80] ss:$8 sps:$4 sm:$0xff]  }
 0x1ab   :  { %1058 = vmatprep.subr.bf16.mxu1 %v1639_v19  ;;  %1099 = vmatprep.subr.bf16.mxu0 %v1675_v62  ;;  %v1699_v19 = vld [vmem:[%s2547_s6 + $0x104] ss:$8 sps:$4 sm:$0xff]  }
 0x1ae   :  { %1059 = vmatpush1.bf16.msra.mxu1 %v1637_v20  ;;  %1100 = vmatpush1.bf16.msra.mxu0 %v1673_v39  ;;  %v1697_v20 = vld [vmem:[%s2547_s6 + $0x100] ss:$8 sps:$4 sm:$0xff]  }
 0x1af   :  { %1060 = vmatprep.subr.bf16.mxu1 %v1642_v23  ;;  %1101 = vmatprep.subr.bf16.mxu0 %v1681_v54 }
 0x1b2   :  { %1061 = vmatpush1.bf16.msra.mxu1 %v1640_v24  ;;  %1102 = vmatpush1.bf16.msra.mxu0 %v1679_v3 }
 0x1b3   :  { %1062 = vmatprep.subr.bf16.mxu1 %v1645_v29  ;;  %1103 = vmatprep.subr.bf16.mxu0 %v1687_v34 }
 0x1b6   :  { %1063 = vmatpush1.bf16.msra.mxu1 %v1643_v28  ;;  %1104 = vmatpush1.bf16.msra.mxu0 %v1685_v10 }
 0x1b7   :  { %1064 = vmatprep.subr.bf16.mxu1 %v1648_v31  ;;  %1105 = vmatprep.subr.bf16.mxu0 %v1693_v15 }
 0x1ba   :  { %1065 = vmatpush1.bf16.msra.mxu1 %v1646_v35  ;;  %1106 = vmatpush1.bf16.msra.mxu0 %v1691_v16 }
 0x1bb   :  { %1066 = vmatprep.subr.bf16.mxu1 %v1651_v40  ;;  %1107 = vmatprep.subr.bf16.mxu0 %v1699_v19 }
 0x1be   :  { %1067 = vmatpush1.bf16.msra.mxu1 %v1649_v41  ;;  %1108 = vmatpush1.bf16.msra.mxu0 %v1697_v20 }
 0x1bf   :  { %1068 = vmatprep.subr.bf16.mxu1 %v1654_v44 }
 0x1c2   :  { %1069 = vmatpush2.bf16.msra.mxu1 %v1652_v46 }
 0x1c3   :  { %1070 = vmatprep.subr.bf16.mxu1 %v1660_v49 }
 0x1c6   :  { %1071 = vmatpush2.bf16.msra.mxu1 %v1658_v50 }
 0x1c7   :  { %1072 = vmatprep.subr.bf16.mxu1 %v1666_v55 }
 0x1ca   :  { %1073 = vmatpush2.bf16.msra.mxu1 %v1664_v56 }
 0x1cb   :  { %1074 = vmatprep.subr.bf16.mxu1 %v1672_v59 }
 0x1ce   :  { %1075 = vmatpush2.bf16.msra.mxu1 %v1670_v60 }
 0x1cf   :  { %1076 = vmatprep.subr.bf16.mxu1 %v1678_v1 }
 0x1d2   :  { %1077 = vmatpush2.bf16.msra.mxu1 %v1676_v2 }
 0x1d3   :  { %1078 = vmatprep.subr.bf16.mxu1 %v1684_v4 }
 0x1d6   :  { %1079 = vmatpush2.bf16.msra.mxu1 %v1682_v6 }
 0x24b   :  { %v2267_v12 = vpop.f32.mrf.mxu1 }
 0x24c   :  { %411 = vadd.xlane.f32.xlu1 %v2267_v12  ;;  %v414_v13 = vmul.f32 %v2267_v12, %v2267_v12 }
 0x24d   :  { %v1558_v14 = vpop.f32.mrf.mxu1 }
 0x24e   :  { %v1688_v14 = vld [vmem:[%s2547_s6 + $0x90] ss:$8 sps:$4 sm:$0xff]  }
 0x250   :  { %415 = vadd.xlane.f32.xlu1 %v414_v13  ;;  %v1690_v13 = vld [vmem:[%s2547_s6 + $0x94] ss:$8 sps:$4 sm:$0xff]   ;;  %s1734_s6 = smov 112  }
 0x251   :  { %1080 = vmatprep.subr.bf16.mxu1 %v1690_v13 }
 0x252   :  { %1081 = vmatpush2.bf16.msra.mxu1 %v1688_v14 }
 0x253   :  { %1082 = vmatprep.subr.bf16.mxu1 %v1696_v17 }
 0x256   :  { %1083 = vmatpush2.bf16.msra.mxu1 %v1694_v18 }
 0x25f   :  { %v2293_v22 = vpop.f32.mrf.mxu0 }
 0x260   :  { %733 = vadd.xlane.f32.xlu0 %v2293_v22  ;;  %v736_v36 = vmul.f32 %v2293_v22, %v2293_v22 }
 0x261   :  { %v2302_v25 = vpop.f32.mrf.mxu1  ;;  %v1600_v26 = vpop.f32.mrf.mxu0  ;;  %591 = vperm.xlu1 %1626, %v1413_v21  }
 0x262   :  { %v576_v32 = vmul.f32 %v2302_v25, %v2302_v25 }
 0x263   :  { %v1579_v30 = vpop.f32.mrf.mxu1 }
 0x264   :  { %573 = vadd.xlane.f32.xlu0 %v2302_v25 }
 0x265   :  { %751 = vperm.xlu1 %1626, %v1418_v27  }
 0x268   :  { %577 = vadd.xlane.f32.xlu0 %v576_v32 }
 0x269   :  { %599 = vperm.xlu1 %1626, %v1414_v33  }
 0x26c   :  { %737 = vadd.xlane.f32.xlu0 %v736_v36 }
 0x26d   :  { %435 = vperm.xlu1 %1626, %v432_v38  }
 0x271   :  { %759 = vperm.xlu1 %1626, %v1419_v42  }
 0x282   :  { %428 = vperm.xlu0 %1627, %v425_v0  }
 0x2d5   :  { %v412_v21 = vpop.xlane.xlu1 %411 }
 0x2d6   :  { %v413_v24 = vmul.f32 0.015625, %v412_v21 }
 0x2d8   :  { %v418_v26 = vmul.f32 %v413_v24, %v413_v24  ;;  %v421_v57 = vsub.f32 %v2267_v12, %v413_v24 }
 0x2d9   :  { %v416_v23 = vpop.xlane.xlu1 %415 }
 0x2da   :  { %v417_v27 = vmul.f32 0.015625, %v416_v23 }
 0x2dc   :  { %v419_v28 = vsub.f32 %v417_v27, %v418_v26 }
 0x2dd   :  { %v592_v37 = vpop.permute.xlu1 %591 }
 0x2de   :  { %v420_v30 = vmax.f32 %v419_v28, 0.0 }
 0x2e0   :  { %v422_v33 = vadd.f32 1e-05, %v420_v30 }
 0x2e1   :  { %v752_v55 = vpop.permute.xlu1 %751 }
 0x2e2   :  { %1701 = vrsqrt.f32 %v422_v33 }
 0x2e5   :  { %v600_v58 = vpop.permute.xlu1 %599 }
 0x2e9   :  { %v734_v29 = vpop.xlane.xlu0 %733  ;;  %v436_v2 = vpop.permute.xlu1 %435 }
 0x2ea   :  { %v735_v36 = vmul.f32 0.25, %v734_v29 }
 0x2ec   :  { %v740_v44 = vmul.f32 %v735_v36, %v735_v36  ;;  %v743_v54 = vsub.f32 %v2293_v22, %v735_v36 }
 0x2ed   :  { %v574_v31 = vpop.xlane.xlu0 %573  ;;  %v760_v12 = vpop.permute.xlu1 %759 }
 0x2ee   :  { %v575_v32 = vmul.f32 0.0625, %v574_v31 }
 0x2ef   :  { %v1702_v56 = vpop.eup %1701 }
 0x2f0   :  { %v580_v38 = vmul.f32 %v575_v32, %v575_v32  ;;  %v424_v60 = vmul.f32 %v1702_v56, %v421_v57  ;;  %v583_v62 = vsub.f32 %v2302_v25, %v575_v32 }
 0x2f1   :  { %v578_v35 = vpop.xlane.xlu0 %577 }
 0x2f2   :  { %v579_v40 = vmul.f32 0.0625, %v578_v35 }
 0x2f4   :  { %v581_v41 = vsub.f32 %v579_v40, %v580_v38 }
 0x2f5   :  { %v738_v42 = vpop.xlane.xlu0 %737 }
 0x2f6   :  { %v582_v46 = vmax.f32 %v581_v41, 0.0  ;;  %v739_v48 = vmul.f32 0.25, %v738_v42 }
 0x2f8   :  { %v584_v49 = vadd.f32 1e-05, %v582_v46  ;;  %v741_v50 = vsub.f32 %v739_v48, %v740_v44 }
 0x2fa   :  { %1703 = vrsqrt.f32 %v584_v49  ;;  %v742_v51 = vmax.f32 %v741_v50, 0.0 }
 0x2fc   :  { %v744_v53 = vadd.f32 1e-05, %v742_v51 }
 0x2fd   :  { %v429_v59 = vpop.permute.xlu0 %428 }
 0x2fe   :  { %1705 = vrsqrt.f32 %v744_v53  ;;  %v431_v39 = vmul.f32 %v429_v59, %v424_v60 }
 0x300   :  { %v438_v6 = vadd.f32 %v436_v2, %v431_v39 }
 0x302   :  { %v439_v15 = vpack.c.bf16 %v438_v6, %v438_v6 }
 0x307   :  { %v1704_v0 = vpop.eup %1703 }
 0x308   :  { %v586_v1 = vmul.f32 %v1704_v0, %v583_v62 }
 0x30a   :  { %v594_v3 = vmul.f32 %v592_v37, %v586_v1 }
 0x30b   :  { %v1706_v4 = vpop.eup %1705 }
 0x30c   :  { %v602_v34 = vadd.f32 %v600_v58, %v594_v3  ;;  %v746_v10 = vmul.f32 %v1706_v4, %v743_v54 }
 0x30e   :  { %v603_v13 = vpack.c.bf16 %v602_v34, %v602_v34  ;;  %v754_v14 = vmul.f32 %v752_v55, %v746_v10 }
 0x310   :  { %v762_v16 = vadd.f32 %v760_v12, %v754_v14  ;;  %1084 = vmatprep.mubr.bf16.mxu1 %v603_v13 }
 0x311   :  { %1085 = vmatmul.mubr.bf16.vlgmr.msra.gmra.mxu1 %v439_v15 }
 0x312   :  { %v763_v17 = vpack.c.bf16 %v762_v16, %v762_v16 }
 0x314   :  { %1126 = vmatmul.mubr.bf16.vlgmr.msra.gmra.mxu0 %v763_v17 }
 0x315   :  { %1389 = vmatprep.mubr.bf16.mxu0 %v1733_v8 }
 0x3d1   :  { %v1086_v25 = vpop.f32.mrf.mxu1 }
 0x3d3   :  { %v1088_v18 = vpop.f32.mrf.mxu1 }
 0x3d4   :  { %v1127_v19 = vpop.f32.mrf.mxu0 }
 0x3d5   :  { %v1128_v22 = vadd.f32 %v1127_v19, %v1086_v25  ;;  %v1090_v20 = vpop.f32.mrf.mxu1 }
 0x3d6   :  { %v1129_v21 = vpop.f32.mrf.mxu0 }
 0x3d7   :  { %v1134_v23 = vadd.f32 %v1128_v22, %v2030_v11  ;;  %v1130_v24 = vadd.f32 %v1129_v21, %v1088_v18  ;;  %v1091_v26 = vpop.f32.mrf.mxu1 }
 0x3d8   :  { %v1131_v27 = vpop.f32.mrf.mxu0 }
 0x3d9   :  { %v1136_v28 = vand.u32 2147483647, %v1134_v23  ;;  %v1135_v29 = vadd.f32 %v1130_v24, %v2022_v9  ;;  %vm1176_vm2 = vcmp.ge.f32.partialorder %v1134_v23, 0.0  ;;  %v1182_v16 = vmul.f32 0.5, %v1134_v23 }
 0x3da   :  { %v1132_v30 = vpop.f32.mrf.mxu0  ;;  %v2469_v24 = vand.u32 127, %v282_v43  ;;  %v2481_v43 = vld [vmem:[%s2551_s10] sm:$0xff] }
 0x3db   :  { %v1138_v31 = vmul.f32 0.70710677, %v1136_v28  ;;  %v1137_v32 = vand.u32 2147483647, %v1135_v29  ;;  %vm1177_vm3 = vcmp.ge.f32.partialorder %v1135_v29, 0.0  ;;  %v1183_v20 = vmul.f32 0.5, %v1135_v29 }
 0x3dc   :  { %vm1317_vm4 = vcmp.lt.s32.totalorder %v2469_v24, 111  ;;  %v1468_v28 = vld [vmem:[%s2551_s10 + $0x10] ss:$0 sm:$0xff]  ;;  %v1469_v29 = vld [vmem:[%s2551_s10 + $0x18] ss:$0 sm:$0xff]  ;;  %vm1283_vm6 = vcmp.lt.s32.totalorder %v2469_v24, 113 }
 0x3dd   :  { %v1140_v33 = vmul.f32 0.3275911, %v1138_v31  ;;  %v1139_v35 = vmul.f32 0.70710677, %v1137_v32  ;;  %v1164_v40 = vsub.f32 0.0, %v1138_v31  ;;  %vm1300_vm7 = vcmp.lt.s32.totalorder %v2469_v24, 112 }
 0x3de   :  { %vm1266_vm8 = vcmp.lt.s32.totalorder %v2469_v24, 127  ;;  %vm1232_vm9 = vcmp.lt.s32.totalorder %v2469_v24, 15  ;;  %vm1249_vm10 = vcmp.lt.s32.totalorder %v2469_v24, 1  ;;  %vm1198_vm11 = vcmp.lt.s32.totalorder %v2469_v24, 17 }
 0x3df   :  { %v1142_v8 = vadd.f32 1.0, %v1140_v33  ;;  %v1141_v36 = vmul.f32 0.3275911, %v1139_v35  ;;  %v1165_v41 = vsub.f32 0.0, %v1139_v35  ;;  %v1166_v42 = vmul.f32 %v1164_v40, %v1138_v31  ;;  %v2486_v33 = vld [vmem:[%s2551_s10 + $0x8] sm:$0xff] }
 0x3e0   :  { %vm1215_vm12 = vcmp.lt.s32.totalorder %v2469_v24, 16  ;;  %v1700_v24 = vld [vmem:[%s2550_s2] sm:$0xff]  }
 0x3e1   :  { %1707 = vrcp.f32 %v1142_v8  ;;  %v1143_v38 = vadd.f32 1.0, %v1141_v36  ;;  %v1167_v44 = vmul.f32 %v1165_v41, %v1139_v35  ;;  %v1168_v48 = vmul.f32 1.442695, %v1166_v42 }
 0x3e2   :  { %v1289_v42 = vrot.slane %v2481_v43, %v2154_v47 }
 0x3e3   :  { %1709 = vrcp.f32 %v1143_v38  ;;  %v1170_v50 = vmul.f32 1.442695, %v1167_v44 }
 0x3e4   :  { %1711 = vpow2.f32 %v1168_v48  ;;  %v1310_v48 = vrot.slane %v2486_v33, %v2149_v45 }
 0x3e5   :  { %1713 = vpow2.f32 %v1170_v50 }
 0x3ee   :  { %v1708_v11 = vpop.eup %1707 }
 0x3ef   :  { %v1146_v46 = vmul.f32 1.0614054, %v1708_v11 }
 0x3f0   :  { %v1710_v37 = vpop.eup %1709 }
 0x3f1   :  { %v1148_v49 = vadd.f32 -1.4531521, %v1146_v46  ;;  %v1147_v9 = vmul.f32 1.0614054, %v1710_v37  ;;  %v1712_v54 = vpop.eup %1711  ;;  %v1306_v46 = vrot.slane %v2481_v43, %v2149_v45 }
 0x3f2   :  { %v1714_v34 = vpop.eup %1713 }
 0x3f3   :  { %v1150_v51 = vmul.f32 %v1708_v11, %v1148_v49  ;;  %v1149_v53 = vadd.f32 -1.4531521, %v1147_v9 }
 0x3f5   :  { %v1152_v55 = vadd.f32 1.4214138, %v1150_v51  ;;  %v1151_v56 = vmul.f32 %v1710_v37, %v1149_v53  ;;  %v1276_v53 = vrot.slane %v2486_v33, %v2159_v52 }
 0x3f7   :  { %v1154_v57 = vmul.f32 %v1708_v11, %v1152_v55  ;;  %v1153_v58 = vadd.f32 1.4214138, %v1151_v56 }
 0x3f9   :  { %v1156_v59 = vadd.f32 -0.28449672, %v1154_v57  ;;  %v1155_v60 = vmul.f32 %v1710_v37, %v1153_v58 }
 0x3fb   :  { %v1158_v62 = vmul.f32 %v1708_v11, %v1156_v59  ;;  %v1157_v0 = vadd.f32 -0.28449672, %v1155_v60 }
 0x3fd   :  { %v1160_v39 = vadd.f32 0.2548296, %v1158_v62  ;;  %v1159_v1 = vmul.f32 %v1710_v37, %v1157_v0 }
 0x3ff   :  { %v1162_v2 = vmul.f32 %v1708_v11, %v1160_v39  ;;  %v1161_v3 = vadd.f32 0.2548296, %v1159_v1  ;;  %v1293_v11 = vrot.slane %v2486_v33, %v2154_v47  ;;  %v1272_v47 = vrot.slane %v2481_v43, %v2159_v52 }
 0x401   :  { %v1172_v4 = vmul.f32 %v1712_v54, %v1162_v2  ;;  %v1163_v6 = vmul.f32 %v1710_v37, %v1161_v3 }
 0x403   :  { %v1174_v10 = vsub.f32 1.0, %v1172_v4  ;;  %v1173_v13 = vmul.f32 %v1714_v34, %v1163_v6  ;;  %v1238_v6 = vrot.slane %v2481_v43, %v2174_v63  ;;  %v1242_v34 = vrot.slane %v2486_v33, %v2174_v63 }
 0x405   :  { %v1178_v14 = vsub.f32 0.0, %v1174_v10  ;;  %v1175_v15 = vsub.f32 1.0, %v1173_v13  ;;  %v1259_v13 = vrot.slane %v2486_v33, %v2172_v61 }
 0x407   :  { %v1180_v12 = vsel %vm1176_vm2, %v1174_v10, %v1178_v14  ;;  %v1179_v25 = vsub.f32 0.0, %v1175_v15  ;;  %v1255_v10 = vrot.slane %v2481_v43, %v2172_v61  ;;  %v1208_v61 = vrot.slane %v2486_v33, %v2182_v7 }
 0x408   :  { %v1184_v17 = vadd.f32 1.0, %v1180_v12 }
 0x409   :  { %v1181_v19 = vsel %vm1177_vm3, %v1175_v15, %v1179_v25 }
 0x40a   :  { %v2444_v18 = vmul.f32 %v1184_v17, %v1182_v16  ;;  %v1185_v22 = vadd.f32 1.0, %v1181_v19 }
 0x40c   :  { %1296 = vrot.lane.b32.xlu0 %v2444_v18, %s1734_s6  ;;  %1313 = vrot.lane.b32.xlu1 %v2444_v18, %s1735_s5  ;;  %v2451_v21 = vmul.f32 %v1185_v22, %v1183_v20 }
 0x410   :  { %1262 = vrot.lane.b32.xlu0 %v2444_v18, %s1719_s0  ;;  %1279 = vrot.lane.b32.xlu1 %v2444_v18, %s1736_s22 }
 0x414   :  { %1228 = vrot.lane.b32.xlu0 %v2444_v18, %s1737_s7  ;;  %1315 = vrot.lane.b32.xlu1 %v2451_v21, %s1735_s5 }
 0x418   :  { %1245 = vrot.lane.b32.xlu0 %v2444_v18, %s1723_s25  ;;  %1281 = vrot.lane.b32.xlu1 %v2451_v21, %s1736_s22 }
 0x41c   :  { %1192 = vrot.lane.b32.xlu0 %v2444_v18, %s1738_s9  ;;  %1298 = vrot.lane.b32.xlu1 %v2451_v21, %s1734_s6 }
 0x420   :  { %1211 = vrot.lane.b32.xlu0 %v2444_v18, %s1739_s23  ;;  %1264 = vrot.lane.b32.xlu1 %v2451_v21, %s1719_s0 }
 0x424   :  { %1230 = vrot.lane.b32.xlu1 %v2451_v21, %s1737_s7 }
 0x428   :  { %1247 = vrot.lane.b32.xlu1 %v2451_v21, %s1723_s25 }
 0x42c   :  { %1194 = vrot.lane.b32.xlu1 %v2451_v21, %s1738_s9 }
 0x430   :  { %1213 = vrot.lane.b32.xlu1 %v2451_v21, %s1739_s23 }
 0x47e   :  { %v1314_v23 = vpop.permute.xlu1 %1313  ;;  %v1297_v27 = vpop.permute.xlu0 %1296 }
 0x482   :  { %v1280_v26 = vpop.permute.xlu1 %1279  ;;  %v1263_v36 = vpop.permute.xlu0 %1262 }
 0x486   :  { %v1316_v30 = vpop.permute.xlu1 %1315  ;;  %v1229_v55 = vpop.permute.xlu0 %1228 }
 0x487   :  { %v1318_v31 = vsel %vm1317_vm4, %v1314_v23, %v1316_v30  ;;  %v1319_v32 = vsel %vm1317_vm4, %v1316_v30, %v1314_v23 }
 0x488   :  { %v1328_v35 = vmul.f32 %v1468_v28, %v1318_v31  ;;  %v1329_v8 = vmul.f32 %v1469_v29, %v1319_v32  ;;  %v1225_v28 = vrot.slane %v2486_v33, %v2178_v5 }
 0x48a   :  { %v1340_v38 = vpack.c.bf16 %v1328_v35, %v1328_v35  ;;  %v1341_v40 = vpack.c.bf16 %v1329_v8, %v1329_v8  ;;  %v1282_v41 = vpop.permute.xlu1 %1281  ;;  %v1246_v54 = vpop.permute.xlu0 %1245 }
 0x48b   :  { %v1284_v37 = vsel %vm1283_vm6, %v1280_v26, %v1282_v41  ;;  %v1285_v49 = vsel %vm1283_vm6, %v1282_v41, %v1280_v26  ;;  %v1204_v26 = vrot.slane %v2481_v43, %v2182_v7 }
 0x48c   :  { %1471 = vmatprep.subr.msk.bf16.mxu0 %vm1350_vm5, %v1341_v40  ;;  %v1352_v44 = vsel %vm1350_vm5, %v1340_v38, 0  ;;  %v1294_v56 = vmul.f32 %v1289_v42, %v1284_v37  ;;  %v1295_v57 = vmul.f32 %v1293_v11, %v1285_v49 }
 0x48d   :  { %1364 = vmatpush1.bf16.msra.mxu0 %v1352_v44 }
 0x48e   :  { %v1299_v9 = vpop.permute.xlu1 %1298  ;;  %v1193_v25 = vpop.permute.xlu0 %1192 }
 0x48f   :  { %v1301_v50 = vsel %vm1300_vm7, %v1297_v27, %v1299_v9  ;;  %v1302_v51 = vsel %vm1300_vm7, %v1299_v9, %v1297_v27  ;;  %v1221_v27 = vrot.slane %v2481_v43, %v2178_v5 }
 0x490   :  { %v1311_v58 = vmul.f32 %v1306_v46, %v1301_v50  ;;  %v1312_v59 = vmul.f32 %v1310_v48, %v1302_v51 }
 0x492   :  { %v1338_v45 = vpack.c.bf16 %v1311_v58, %v1294_v56  ;;  %v1265_v60 = vpop.permute.xlu1 %1264  ;;  %v1339_v62 = vpack.c.bf16 %v1312_v59, %v1295_v57  ;;  %v1212_v31 = vpop.permute.xlu0 %1211 }
 0x493   :  { %v1267_v0 = vsel %vm1266_vm8, %v1263_v36, %v1265_v60  ;;  %v1268_v39 = vsel %vm1266_vm8, %v1265_v60, %v1263_v36 }
 0x494   :  { %v1277_v1 = vmul.f32 %v1272_v47, %v1267_v0  ;;  %v1278_v2 = vmul.f32 %v1276_v53, %v1268_v39  ;;  %1365 = vmatprep.subr.bf16.mxu0 %v1339_v62 }
 0x495   :  { %1366 = vmatpush1.bf16.msra.mxu0 %v1338_v45 }
 0x496   :  { %v1336_v3 = vpack.c.bf16 %v1277_v1, %v2444_v18  ;;  %v1231_v52 = vpop.permute.xlu1 %1230  ;;  %v1337_v4 = vpack.c.bf16 %v1278_v2, %v2451_v21 }
 0x497   :  { %v1233_v14 = vsel %vm1232_vm9, %v1229_v55, %v1231_v52  ;;  %v1234_v15 = vsel %vm1232_vm9, %v1231_v52, %v1229_v55 }
 0x498   :  { %1367 = vmatprep.subr.bf16.mxu0 %v1337_v4  ;;  %v1243_v18 = vmul.f32 %v1238_v6, %v1234_v15  ;;  %v1244_v19 = vmul.f32 %v1242_v34, %v1233_v14 }
 0x499   :  { %1368 = vmatpush1.bf16.msra.mxu0 %v1336_v3 }
 0x49a   :  { %v1248_v12 = vpop.permute.xlu1 %1247 }
 0x49b   :  { %v1250_v16 = vsel %vm1249_vm10, %v1246_v54, %v1248_v12  ;;  %v1251_v17 = vsel %vm1249_vm10, %v1248_v12, %v1246_v54 }
 0x49c   :  { %v1260_v22 = vmul.f32 %v1255_v10, %v1251_v17  ;;  %v1261_v63 = vmul.f32 %v1259_v13, %v1250_v16 }
 0x49e   :  { %v1334_v20 = vpack.c.bf16 %v1260_v22, %v1243_v18  ;;  %v1195_v21 = vpop.permute.xlu1 %1194  ;;  %v1335_v23 = vpack.c.bf16 %v1261_v63, %v1244_v19 }
 0x49f   :  { %v1199_v29 = vsel %vm1198_vm11, %v1193_v25, %v1195_v21  ;;  %v1200_v30 = vsel %vm1198_vm11, %v1195_v21, %v1193_v25 }
 0x4a0   :  { %1369 = vmatprep.subr.bf16.mxu0 %v1335_v23  ;;  %v1209_v36 = vmul.f32 %v1204_v26, %v1200_v30  ;;  %v1210_v38 = vmul.f32 %v1208_v61, %v1199_v29 }
 0x4a1   :  { %1370 = vmatpush1.bf16.msra.mxu0 %v1334_v20 }
 0x4a2   :  { %v1214_v32 = vpop.permute.xlu1 %1213 }
 0x4a3   :  { %v1216_v35 = vsel %vm1215_vm12, %v1212_v31, %v1214_v32  ;;  %v1217_v8 = vsel %vm1215_vm12, %v1214_v32, %v1212_v31 }
 0x4a4   :  { %v1226_v40 = vmul.f32 %v1221_v27, %v1217_v8  ;;  %v1227_v7 = vmul.f32 %v1225_v28, %v1216_v35 }
 0x4a6   :  { %v1332_v41 = vpack.c.bf16 %v1226_v40, %v1209_v36  ;;  %v1333_v42 = vpack.c.bf16 %v1227_v7, %v1210_v38 }
 0x4a8   :  { %1371 = vmatprep.subr.bf16.mxu0 %v1333_v42 }
 0x4a9   :  { %1372 = vmatpush1.bf16.msra.mxu0 %v1332_v41 }
 0x4ac   :  { %1472 = vmatmul.mubr.msk.bf16.vlgmr.msra.gmra.mxu0 %vm337_vm1, %v1700_v24 }
 0x56c   :  { %v1391_v5 = vpop.f32.mrf.mxu0 }
 0x56d   :  { %1400 = vst [vmem:[%s2552_s11] sm:$0xff] %v1391_v5 }
 0x56e   :  { %v1393_v43 = vpop.f32.mrf.mxu0 }
 0x56f   :  { %1401 = vst [vmem:[%s2552_s11 + $0x8] sm:$0xff] %v1393_v43 }
 0x570   :  { %v1395_v33 = vpop.f32.mrf.mxu0 }
 0x571   :  { %1402 = vst [vmem:[%s2552_s11 + $0x10] sm:$0xff] %v1395_v33 }
 0x572   :  { %v1397_v11 = vpop.f32.mrf.mxu0 }
 0x573   :  { %1403 = vst [vmem:[%s2552_s11 + $0x18] sm:$0xff] %v1397_v11 }

</bundles_post_ra>
